<compile_context>
chip_gen: v7x
topology: tpu7x:2x2x1
jax: 0.10.0
libtpu: 0.0.40
codegen_flags: <defaults>
</compile_context>

<pallas_src>
import functools

import jax
import jax.numpy as jnp
from jax.experimental import pallas as pl
from jax.experimental.pallas import tpu as pltpu


# ---------------------------------------------------------------------------
# Fused bottleneck kernel (one grid step == one image)
# ---------------------------------------------------------------------------
def _bottleneck_core(x2d, w1_ref, w2_ref, b1_ref, b2_ref, pad_ref, *,
                     H, W, Ho, Wo, stride):
    """conv1(1x1)+bn1+relu -> VMEM zero-padded scratch -> conv2(3x3)+bn2+relu.

    Returns out2 as (Ho*Wo, planes) float32. BN scales are pre-folded into
    the weights; b1/b2 are the folded biases.
    """
    planes = w1_ref.shape[1]

    # conv1 (1x1) + bias + relu   -- (H*W, cin) @ (cin, planes) on the MXU
    out1 = jnp.dot(x2d, w1_ref[...], preferred_element_type=jnp.float32)
    out1 = jnp.maximum(out1 + b1_ref[...], 0.0)

    # Zero-padded spatial buffer for conv2's padding=1 (never leaves VMEM).
    pad_ref[...] = jnp.zeros(pad_ref.shape, pad_ref.dtype)
    pad_ref[1:H + 1, 1:W + 1, :] = out1.reshape(H, W, planes).astype(pad_ref.dtype)

    # conv2 (3x3, stride, pad=1): 9 accumulating MXU matmuls over shifted
    # (and, for stride>1, strided) windows of the padded scratch.
    acc = jnp.zeros((Ho * Wo, planes), jnp.float32)
    for t in range(9):
        dy, dx = t // 3, t % 3
        if stride == 1:
            win = pad_ref[dy:dy + Ho, dx:dx + Wo, :]
        else:
            win = pad_ref[pl.ds(dy, Ho, stride), pl.ds(dx, Wo, stride), :]
        acc += jnp.dot(win.reshape(Ho * Wo, planes), w2_ref[t],
                       preferred_element_type=jnp.float32)
    return jnp.maximum(acc + b2_ref[...], 0.0)


def _bottleneck_sc_kernel(x_ref, xs_ref, w1_ref, w2_ref, w3_ref, wsc_ref,
                          b1_ref, b2_ref, b3_ref, o_ref, pad_ref, *,
                          H, W, Ho, Wo, stride):
    """Bottleneck with a projection (1x1 conv) shortcut, fully fused."""
    x2d = x_ref[0]                                    # (H*W, cin)
    out2 = _bottleneck_core(x2d, w1_ref, w2_ref, b1_ref, b2_ref, pad_ref,
                            H=H, W=W, Ho=Ho, Wo=Wo, stride=stride)
    # conv3 (1x1) + shortcut conv + combined (bn3 + bn_sc) bias + relu
    out = jnp.dot(out2.astype(w3_ref.dtype), w3_ref[...],
                  preferred_element_type=jnp.float32)
    out = out + jnp.dot(xs_ref[0], wsc_ref[...],
                        preferred_element_type=jnp.float32)
    out = out + b3_ref[...]
    o_ref[0] = jnp.maximum(out, 0.0).astype(o_ref.dtype)


def _bottleneck_id_kernel(x_ref, w1_ref, w2_ref, w3_ref,
                          b1_ref, b2_ref, b3_ref, o_ref, pad_ref, *,
                          H, W, Ho, Wo, stride):
    """Bottleneck with an identity shortcut (stride==1, cin==out_planes)."""
    x2d = x_ref[0]                                    # (H*W, cin == out_planes)
    out2 = _bottleneck_core(x2d, w1_ref, w2_ref, b1_ref, b2_ref, pad_ref,
                            H=H, W=W, Ho=Ho, Wo=Wo, stride=stride)
    out = jnp.dot(out2.astype(w3_ref.dtype), w3_ref[...],
                  preferred_element_type=jnp.float32)
    out = out + x2d.astype(jnp.float32) + b3_ref[...]
    o_ref[0] = jnp.maximum(out, 0.0).astype(o_ref.dtype)


# ---------------------------------------------------------------------------
# Wrapper: BN folding + one fused pallas_call, NHWC in / NHWC out
# ---------------------------------------------------------------------------
def fold_bn(bn, eps=1e-5):
    gamma, beta, mean, var = bn
    scale = gamma / jnp.sqrt(var + eps)
    bias = beta - mean * scale
    return scale, bias


def bottleneck_block_nhwc(x, p, stride, *, compute_dtype=jnp.float32,
                          out_dtype=jnp.float32, vmem_limit_bytes=None):
    """Fused bottleneck block.  x: (N, H, W, cin) NHWC -> (N, Ho, Wo, out)."""
    N, H, W, cin = x.shape
    planes = p["w1"].shape[0]
    out_planes = p["w3"].shape[0]
    Ho = (H - 1) // stride + 1
    Wo = (W - 1) // stride + 1

    # Fold BN scale into the conv weights (one fewer per-tile vmul + DMA).
    s1, b1 = fold_bn(p["bn1"])
    s2, b2 = fold_bn(p["bn2"])
    s3, b3 = fold_bn(p["bn3"])
    w1 = (p["w1"][:, :, 0, 0].T * s1[None, :]).astype(compute_dtype)          # (cin, planes)
    w2 = (jnp.transpose(p["w2"], (2, 3, 1, 0)).reshape(9, planes, planes)
          * s2[None, None, :]).astype(compute_dtype)                          # (9, planes, planes)
    w3 = (p["w3"][:, :, 0, 0].T * s3[None, :]).astype(compute_dtype)          # (planes, out_planes)
    b1v = b1.reshape(1, planes).astype(jnp.float32)
    b2v = b2.reshape(1, planes).astype(jnp.float32)

    xc = x.astype(compute_dtype)
    x_flat = xc.reshape(N, H * W, cin)

    img_spec = lambda rows, c: pl.BlockSpec((1, rows, c), lambda n: (n, 0, 0))
    mat_spec = lambda a: pl.BlockSpec(a.shape, lambda n: (0, 0))
    vec_spec = lambda c: pl.BlockSpec((1, c), lambda n: (0, 0))
    w2_spec = pl.BlockSpec(w2.shape, lambda n: (0, 0, 0))

    out_shape = jax.ShapeDtypeStruct((N, Ho * Wo, out_planes), out_dtype)
    o_spec = pl.BlockSpec((1, Ho * Wo, out_planes), lambda n: (n, 0, 0))
    scratch = [pltpu.VMEM((H + 2, W + 2, planes), compute_dtype)]
    cparams = pltpu.CompilerParams(dimension_semantics=("parallel",),
                                   vmem_limit_bytes=vmem_limit_bytes)

    if p["has_shortcut"]:
        ssc, bsc = fold_bn(p["bnsc"])
        wsc = (p["wsc"][:, :, 0, 0].T * ssc[None, :]).astype(compute_dtype)   # (cin, out_planes)
        b3v = (b3 + bsc).reshape(1, out_planes).astype(jnp.float32)
        xs_flat = xc[:, ::stride, ::stride, :].reshape(N, Ho * Wo, cin)
        kernel = functools.partial(_bottleneck_sc_kernel,
                                   H=H, W=W, Ho=Ho, Wo=Wo, stride=stride)
        in_specs = [img_spec(H * W, cin), img_spec(Ho * Wo, cin),
                    mat_spec(w1), w2_spec, mat_spec(w3), mat_spec(wsc),
                    vec_spec(planes), vec_spec(planes), vec_spec(out_planes)]
        args = (x_flat, xs_flat, w1, w2, w3, wsc, b1v, b2v, b3v)
    else:
        assert stride == 1 and cin == out_planes, (
            "identity shortcut requires stride==1 and cin==out_planes")
        b3v = b3.reshape(1, out_planes).astype(jnp.float32)
        kernel = functools.partial(_bottleneck_id_kernel,
                                   H=H, W=W, Ho=Ho, Wo=Wo, stride=stride)
        in_specs = [img_spec(H * W, cin),
                    mat_spec(w1), w2_spec, mat_spec(w3),
                    vec_spec(planes), vec_spec(planes), vec_spec(out_planes)]
        args = (x_flat, w1, w2, w3, b1v, b2v, b3v)

    out = pl.pallas_call(
        kernel,
        out_shape=out_shape,
        grid=(N,),
        in_specs=in_specs,
        out_specs=o_spec,
        scratch_shapes=scratch,
        compiler_params=cparams,
    )(*args)
    return out.reshape(N, Ho, Wo, out_planes)


def bottleneck_forward(x_nchw, p, stride, **kwargs):
    """PyTorch-layout entry point (NCHW in / NCHW out).

    Real block chains should stay in NHWC and call bottleneck_block_nhwc
    directly so the layout transposes never hit HBM between blocks.
    """
    x = jnp.transpose(x_nchw, (0, 2, 3, 1)).astype(jnp.float32)
    out = bottleneck_block_nhwc(x, p, stride, **kwargs)
    return jnp.transpose(out, (0, 3, 1, 2))


# ---------------------------------------------------------------------------
# Parameter init + pure-JAX reference (lax.conv) for correctness checking
# ---------------------------------------------------------------------------
def init_params(key, in_planes, planes, stride, expansion=4):
    ks = jax.random.split(key, 8)

    def conv_w(k, shape):  # PyTorch OIHW
        fan_in = shape[1] * shape[2] * shape[3]
        return jax.random.normal(k, shape, jnp.float32) / jnp.sqrt(float(fan_in))

    def bn_p(k, c):
        k1, k2, k3, k4 = jax.random.split(k, 4)
        gamma = 0.5 + jax.random.uniform(k1, (c,), jnp.float32)
        beta = 0.1 * jax.random.normal(k2, (c,), jnp.float32)
        mean = 0.1 * jax.random.normal(k3, (c,), jnp.float32)
        var = 0.5 + jax.random.uniform(k4, (c,), jnp.float32)
        return gamma, beta, mean, var

    out_planes = expansion * planes
    p = {
        "w1": conv_w(ks[0], (planes, in_planes, 1, 1)),
        "bn1": bn_p(ks[1], planes),
        "w2": conv_w(ks[2], (planes, planes, 3, 3)),
        "bn2": bn_p(ks[3], planes),
        "w3": conv_w(ks[4], (out_planes, planes, 1, 1)),
        "bn3": bn_p(ks[5], out_planes),
        "has_shortcut": (stride != 1) or (in_planes != out_planes),
    }
    if p["has_shortcut"]:
        p["wsc"] = conv_w(ks[6], (out_planes, in_planes, 1, 1))
        p["bnsc"] = bn_p(ks[7], out_planes)
    return p


def ref_forward(x, p, stride, eps=1e-5):
    dn = ("NCHW", "OIHW", "NCHW")

    def conv(x, w, s=1, pad=0):
        return jax.lax.conv_general_dilated(
            x, w, (s, s), [(pad, pad), (pad, pad)], dimension_numbers=dn)

    def bn(x, bnp):
        gamma, beta, mean, var = bnp
        sc = gamma / jnp.sqrt(var + eps)
        return x * sc[None, :, None, None] + (beta - mean * sc)[None, :, None, None]

    out = jax.nn.relu(bn(conv(x, p["w1"]), p["bn1"]))
    out = jax.nn.relu(bn(conv(out, p["w2"], s=stride, pad=1), p["bn2"]))
    out = bn(conv(out, p["w3"]), p["bn3"])
    if p["has_shortcut"]:
        sc = bn(conv(x, p["wsc"], s=stride), p["bnsc"])
    else:
        sc = x
    return jax.nn.relu(out + sc)


if __name__ == "__main__":
    key = jax.random.PRNGKey(0)
    kx, kp, kp2 = jax.random.split(key, 3)

    N, H, W = 2, 16, 16

    # Case 1: projection-shortcut block (4 -> 16 channels, stride 1), f32.
    in_planes, planes, stride = 4, 4, 1
    x = jax.random.normal(kx, (N, in_planes, H, W), jnp.float32)   # NCHW
    params = init_params(kp, in_planes, planes, stride)
    out = jax.block_until_ready(bottleneck_forward(x, params, stride))
    ref = jax.block_until_ready(ref_forward(x, params, stride))
    assert out.shape == ref.shape == (N, 4 * planes, H, W), (out.shape, ref.shape)
    assert jnp.allclose(out, ref, atol=2e-3, rtol=2e-3), float(
        jnp.max(jnp.abs(out - ref)))

    # Case 2: identity-shortcut block (16 -> 16 channels, stride 1), f32.
    params2 = init_params(kp2, 16, 4, 1)
    x2 = jax.random.normal(kx, (N, 16, H, W), jnp.float32)
    out2 = jax.block_until_ready(bottleneck_forward(x2, params2, 1))
    ref2 = jax.block_until_ready(ref_forward(x2, params2, 1))
    assert out2.shape == ref2.shape == (N, 16, H, W)
    assert jnp.allclose(out2, ref2, atol=2e-3, rtol=2e-3), float(
        jnp.max(jnp.abs(out2 - ref2)))

    # Case 3: bf16 compute path (v6e/v7x MXU fast path), f32 accumulation.
    out_bf = jax.block_until_ready(
        bottleneck_forward(x, params, stride, compute_dtype=jnp.bfloat16))
    err = float(jnp.max(jnp.abs(out_bf - ref)) /
                jnp.maximum(1.0, jnp.max(jnp.abs(ref))))
    assert err < 0.05, err

    print("KERNEL_OK")
</pallas_src>

<mosaic_0001>
module attributes {stable_mosaic.version = 11 : i64} {
  func.func @_bottleneck_sc_kernel(%arg0: i32, %arg1: memref<1x256x4xf32, #tpu.memory_space<vmem>>, %arg2: memref<1x256x4xf32, #tpu.memory_space<vmem>>, %arg3: memref<4x4xf32, #tpu.memory_space<vmem>>, %arg4: memref<9x4x4xf32, #tpu.memory_space<vmem>>, %arg5: memref<4x16xf32, #tpu.memory_space<vmem>>, %arg6: memref<4x16xf32, #tpu.memory_space<vmem>>, %arg7: memref<1x4xf32, #tpu.memory_space<vmem>>, %arg8: memref<1x4xf32, #tpu.memory_space<vmem>>, %arg9: memref<1x16xf32, #tpu.memory_space<vmem>>, %arg10: memref<1x256x16xf32, #tpu.memory_space<vmem>>, %arg11: memref<18x18x4xf32, #tpu.memory_space<vmem>>) attributes {dimension_semantics = [#tpu.dimension_semantics<parallel>], iteration_bounds = array<i64: 2>, scalar_prefetch = 0 : i64, scratch_operands = 1 : i64, tpu.core_type = #tpu.core_type<tc>, window_params = [{transform_indices = @transform_0, window_bounds = array<i64: 1, 256, 4>}, {transform_indices = @transform_1, window_bounds = array<i64: 1, 256, 4>}, {pipeline_mode = #tpu.pipeline_mode<synchronous>, transform_indices = @transform_2, window_bounds = array<i64: 4, 4>}, {pipeline_mode = #tpu.pipeline_mode<synchronous>, transform_indices = @transform_3, window_bounds = array<i64: 9, 4, 4>}, {pipeline_mode = #tpu.pipeline_mode<synchronous>, transform_indices = @transform_4, window_bounds = array<i64: 4, 16>}, {pipeline_mode = #tpu.pipeline_mode<synchronous>, transform_indices = @transform_5, window_bounds = array<i64: 4, 16>}, {pipeline_mode = #tpu.pipeline_mode<synchronous>, transform_indices = @transform_6, window_bounds = array<i64: 1, 4>}, {pipeline_mode = #tpu.pipeline_mode<synchronous>, transform_indices = @transform_7, window_bounds = array<i64: 1, 4>}, {pipeline_mode = #tpu.pipeline_mode<synchronous>, transform_indices = @transform_8, window_bounds = array<i64: 1, 16>}, {transform_indices = @transform_9, window_bounds = array<i64: 1, 256, 16>}]} {
    %c0 = arith.constant 0 : index
    %c0_0 = arith.constant 0 : index
    %c0_1 = arith.constant 0 : index
    %0 = vector.load %arg1[%c0, %c0_0, %c0_1] : memref<1x256x4xf32, #tpu.memory_space<vmem>>, vector<1x256x4xf32>
    %1 = vector.shape_cast %0 : vector<1x256x4xf32> to vector<256x4xf32>
    %c0_2 = arith.constant 0 : index
    %c0_3 = arith.constant 0 : index
    %2 = vector.load %arg3[%c0_2, %c0_3] : memref<4x4xf32, #tpu.memory_space<vmem>>, vector<4x4xf32>
    %cst = arith.constant dense<0.000000e+00> : vector<256x4xf32>
    %3 = tpu.matmul %1, %2, %cst {dimension_numbers = #tpu.dot_dimension_numbers<[1], [0], [0], [1], [0, 0, 1, 1], [], []>} : vector<256x4xf32>, vector<4x4xf32>, vector<256x4xf32> -> vector<256x4xf32>
    %c0_4 = arith.constant 0 : index
    %c0_5 = arith.constant 0 : index
    %4 = vector.load %arg7[%c0_4, %c0_5] : memref<1x4xf32, #tpu.memory_space<vmem>>, vector<1x4xf32>
    %5 = vector.broadcast %4 : vector<1x4xf32> to vector<256x4xf32>
    %6 = arith.addf %3, %5 : vector<256x4xf32>
    %cst_6 = arith.constant 0.000000e+00 : f32
    %7 = vector.broadcast %cst_6 : f32 to vector<256x4xf32>
    %8 = arith.maximumf %6, %7 : vector<256x4xf32>
    %cst_7 = arith.constant 0.000000e+00 : f32
    %9 = vector.broadcast %cst_7 : f32 to vector<18x18x4xf32>
    %c0_8 = arith.constant 0 : index
    %c0_9 = arith.constant 0 : index
    %c0_10 = arith.constant 0 : index
    %10 = vector.load %arg11[%c0_8, %c0_9, %c0_10] : memref<18x18x4xf32, #tpu.memory_space<vmem>>, vector<18x18x4xf32>
    tpu.vector_store %arg11[%c0_8, %c0_9, %c0_10], %9 {strides = array<i32>} : memref<18x18x4xf32, #tpu.memory_space<vmem>>, vector<18x18x4xf32>,
    %11 = vector.shape_cast %8 : vector<256x4xf32> to vector<16x16x4xf32>
    %c1 = arith.constant 1 : index
    %c1_11 = arith.constant 1 : index
    %c0_12 = arith.constant 0 : index
    %12 = vector.load %arg11[%c1, %c1_11, %c0_12] : memref<18x18x4xf32, #tpu.memory_space<vmem>>, vector<16x16x4xf32>
    tpu.vector_store %arg11[%c1, %c1_11, %c0_12], %11 {strides = array<i32>} : memref<18x18x4xf32, #tpu.memory_space<vmem>>, vector<16x16x4xf32>,
    %cst_13 = arith.constant 0.000000e+00 : f32
    %13 = vector.broadcast %cst_13 : f32 to vector<256x4xf32>
    %c0_14 = arith.constant 0 : index
    %c0_15 = arith.constant 0 : index
    %c0_16 = arith.constant 0 : index
    %14 = vector.load %arg11[%c0_14, %c0_15, %c0_16] : memref<18x18x4xf32, #tpu.memory_space<vmem>>, vector<16x16x4xf32>
    %15 = vector.shape_cast %14 : vector<16x16x4xf32> to vector<256x4xf32>
    %c0_17 = arith.constant 0 : index
    %c0_18 = arith.constant 0 : index
    %c0_19 = arith.constant 0 : index
    %16 = vector.load %arg4[%c0_17, %c0_18, %c0_19] : memref<9x4x4xf32, #tpu.memory_space<vmem>>, vector<1x4x4xf32>
    %17 = vector.shape_cast %16 : vector<1x4x4xf32> to vector<4x4xf32>
    %cst_20 = arith.constant dense<0.000000e+00> : vector<256x4xf32>
    %18 = tpu.matmul %15, %17, %cst_20 {dimension_numbers = #tpu.dot_dimension_numbers<[1], [0], [0], [1], [0, 0, 1, 1], [], []>} : vector<256x4xf32>, vector<4x4xf32>, vector<256x4xf32> -> vector<256x4xf32>
    %19 = arith.addf %13, %18 : vector<256x4xf32>
    %c0_21 = arith.constant 0 : index
    %c1_22 = arith.constant 1 : index
    %c0_23 = arith.constant 0 : index
    %20 = vector.load %arg11[%c0_21, %c1_22, %c0_23] : memref<18x18x4xf32, #tpu.memory_space<vmem>>, vector<16x16x4xf32>
    %21 = vector.shape_cast %20 : vector<16x16x4xf32> to vector<256x4xf32>
    %c1_24 = arith.constant 1 : index
    %c0_25 = arith.constant 0 : index
    %c0_26 = arith.constant 0 : index
    %22 = vector.load %arg4[%c1_24, %c0_25, %c0_26] : memref<9x4x4xf32, #tpu.memory_space<vmem>>, vector<1x4x4xf32>
    %23 = vector.shape_cast %22 : vector<1x4x4xf32> to vector<4x4xf32>
    %cst_27 = arith.constant dense<0.000000e+00> : vector<256x4xf32>
    %24 = tpu.matmul %21, %23, %cst_27 {dimension_numbers = #tpu.dot_dimension_numbers<[1], [0], [0], [1], [0, 0, 1, 1], [], []>} : vector<256x4xf32>, vector<4x4xf32>, vector<256x4xf32> -> vector<256x4xf32>
    %25 = arith.addf %19, %24 : vector<256x4xf32>
    %c0_28 = arith.constant 0 : index
    %c2 = arith.constant 2 : index
    %c0_29 = arith.constant 0 : index
    %26 = vector.load %arg11[%c0_28, %c2, %c0_29] : memref<18x18x4xf32, #tpu.memory_space<vmem>>, vector<16x16x4xf32>
    %27 = vector.shape_cast %26 : vector<16x16x4xf32> to vector<256x4xf32>
    %c2_30 = arith.constant 2 : index
    %c0_31 = arith.constant 0 : index
    %c0_32 = arith.constant 0 : index
    %28 = vector.load %arg4[%c2_30, %c0_31, %c0_32] : memref<9x4x4xf32, #tpu.memory_space<vmem>>, vector<1x4x4xf32>
    %29 = vector.shape_cast %28 : vector<1x4x4xf32> to vector<4x4xf32>
    %cst_33 = arith.constant dense<0.000000e+00> : vector<256x4xf32>
    %30 = tpu.matmul %27, %29, %cst_33 {dimension_numbers = #tpu.dot_dimension_numbers<[1], [0], [0], [1], [0, 0, 1, 1], [], []>} : vector<256x4xf32>, vector<4x4xf32>, vector<256x4xf32> -> vector<256x4xf32>
    %31 = arith.addf %25, %30 : vector<256x4xf32>
    %c1_34 = arith.constant 1 : index
    %c0_35 = arith.constant 0 : index
    %c0_36 = arith.constant 0 : index
    %32 = vector.load %arg11[%c1_34, %c0_35, %c0_36] : memref<18x18x4xf32, #tpu.memory_space<vmem>>, vector<16x16x4xf32>
    %33 = vector.shape_cast %32 : vector<16x16x4xf32> to vector<256x4xf32>
    %c3 = arith.constant 3 : index
    %c0_37 = arith.constant 0 : index
    %c0_38 = arith.constant 0 : index
    %34 = vector.load %arg4[%c3, %c0_37, %c0_38] : memref<9x4x4xf32, #tpu.memory_space<vmem>>, vector<1x4x4xf32>
    %35 = vector.shape_cast %34 : vector<1x4x4xf32> to vector<4x4xf32>
    %cst_39 = arith.constant dense<0.000000e+00> : vector<256x4xf32>
    %36 = tpu.matmul %33, %35, %cst_39 {dimension_numbers = #tpu.dot_dimension_numbers<[1], [0], [0], [1], [0, 0, 1, 1], [], []>} : vector<256x4xf32>, vector<4x4xf32>, vector<256x4xf32> -> vector<256x4xf32>
    %37 = arith.addf %31, %36 : vector<256x4xf32>
    %c1_40 = arith.constant 1 : index
    %c1_41 = arith.constant 1 : index
    %c0_42 = arith.constant 0 : index
    %38 = vector.load %arg11[%c1_40, %c1_41, %c0_42] : memref<18x18x4xf32, #tpu.memory_space<vmem>>, vector<16x16x4xf32>
    %39 = vector.shape_cast %38 : vector<16x16x4xf32> to vector<256x4xf32>
    %c4 = arith.constant 4 : index
    %c0_43 = arith.constant 0 : index
    %c0_44 = arith.constant 0 : index
    %40 = vector.load %arg4[%c4, %c0_43, %c0_44] : memref<9x4x4xf32, #tpu.memory_space<vmem>>, vector<1x4x4xf32>
    %41 = vector.shape_cast %40 : vector<1x4x4xf32> to vector<4x4xf32>
    %cst_45 = arith.constant dense<0.000000e+00> : vector<256x4xf32>
    %42 = tpu.matmul %39, %41, %cst_45 {dimension_numbers = #tpu.dot_dimension_numbers<[1], [0], [0], [1], [0, 0, 1, 1], [], []>} : vector<256x4xf32>, vector<4x4xf32>, vector<256x4xf32> -> vector<256x4xf32>
    %43 = arith.addf %37, %42 : vector<256x4xf32>
    %c1_46 = arith.constant 1 : index
    %c2_47 = arith.constant 2 : index
    %c0_48 = arith.constant 0 : index
    %44 = vector.load %arg11[%c1_46, %c2_47, %c0_48] : memref<18x18x4xf32, #tpu.memory_space<vmem>>, vector<16x16x4xf32>
    %45 = vector.shape_cast %44 : vector<16x16x4xf32> to vector<256x4xf32>
    %c5 = arith.constant 5 : index
    %c0_49 = arith.constant 0 : index
    %c0_50 = arith.constant 0 : index
    %46 = vector.load %arg4[%c5, %c0_49, %c0_50] : memref<9x4x4xf32, #tpu.memory_space<vmem>>, vector<1x4x4xf32>
    %47 = vector.shape_cast %46 : vector<1x4x4xf32> to vector<4x4xf32>
    %cst_51 = arith.constant dense<0.000000e+00> : vector<256x4xf32>
    %48 = tpu.matmul %45, %47, %cst_51 {dimension_numbers = #tpu.dot_dimension_numbers<[1], [0], [0], [1], [0, 0, 1, 1], [], []>} : vector<256x4xf32>, vector<4x4xf32>, vector<256x4xf32> -> vector<256x4xf32>
    %49 = arith.addf %43, %48 : vector<256x4xf32>
    %c2_52 = arith.constant 2 : index
    %c0_53 = arith.constant 0 : index
    %c0_54 = arith.constant 0 : index
    %50 = vector.load %arg11[%c2_52, %c0_53, %c0_54] : memref<18x18x4xf32, #tpu.memory_space<vmem>>, vector<16x16x4xf32>
    %51 = vector.shape_cast %50 : vector<16x16x4xf32> to vector<256x4xf32>
    %c6 = arith.constant 6 : index
    %c0_55 = arith.constant 0 : index
    %c0_56 = arith.constant 0 : index
    %52 = vector.load %arg4[%c6, %c0_55, %c0_56] : memref<9x4x4xf32, #tpu.memory_space<vmem>>, vector<1x4x4xf32>
    %53 = vector.shape_cast %52 : vector<1x4x4xf32> to vector<4x4xf32>
    %cst_57 = arith.constant dense<0.000000e+00> : vector<256x4xf32>
    %54 = tpu.matmul %51, %53, %cst_57 {dimension_numbers = #tpu.dot_dimension_numbers<[1], [0], [0], [1], [0, 0, 1, 1], [], []>} : vector<256x4xf32>, vector<4x4xf32>, vector<256x4xf32> -> vector<256x4xf32>
    %55 = arith.addf %49, %54 : vector<256x4xf32>
    %c2_58 = arith.constant 2 : index
    %c1_59 = arith.constant 1 : index
    %c0_60 = arith.constant 0 : index
    %56 = vector.load %arg11[%c2_58, %c1_59, %c0_60] : memref<18x18x4xf32, #tpu.memory_space<vmem>>, vector<16x16x4xf32>
    %57 = vector.shape_cast %56 : vector<16x16x4xf32> to vector<256x4xf32>
    %c7 = arith.constant 7 : index
    %c0_61 = arith.constant 0 : index
    %c0_62 = arith.constant 0 : index
    %58 = vector.load %arg4[%c7, %c0_61, %c0_62] : memref<9x4x4xf32, #tpu.memory_space<vmem>>, vector<1x4x4xf32>
    %59 = vector.shape_cast %58 : vector<1x4x4xf32> to vector<4x4xf32>
    %cst_63 = arith.constant dense<0.000000e+00> : vector<256x4xf32>
    %60 = tpu.matmul %57, %59, %cst_63 {dimension_numbers = #tpu.dot_dimension_numbers<[1], [0], [0], [1], [0, 0, 1, 1], [], []>} : vector<256x4xf32>, vector<4x4xf32>, vector<256x4xf32> -> vector<256x4xf32>
    %61 = arith.addf %55, %60 : vector<256x4xf32>
    %c2_64 = arith.constant 2 : index
    %c2_65 = arith.constant 2 : index
    %c0_66 = arith.constant 0 : index
    %62 = vector.load %arg11[%c2_64, %c2_65, %c0_66] : memref<18x18x4xf32, #tpu.memory_space<vmem>>, vector<16x16x4xf32>
    %63 = vector.shape_cast %62 : vector<16x16x4xf32> to vector<256x4xf32>
    %c8 = arith.constant 8 : index
    %c0_67 = arith.constant 0 : index
    %c0_68 = arith.constant 0 : index
    %64 = vector.load %arg4[%c8, %c0_67, %c0_68] : memref<9x4x4xf32, #tpu.memory_space<vmem>>, vector<1x4x4xf32>
    %65 = vector.shape_cast %64 : vector<1x4x4xf32> to vector<4x4xf32>
    %cst_69 = arith.constant dense<0.000000e+00> : vector<256x4xf32>
    %66 = tpu.matmul %63, %65, %cst_69 {dimension_numbers = #tpu.dot_dimension_numbers<[1], [0], [0], [1], [0, 0, 1, 1], [], []>} : vector<256x4xf32>, vector<4x4xf32>, vector<256x4xf32> -> vector<256x4xf32>
    %67 = arith.addf %61, %66 : vector<256x4xf32>
    %c0_70 = arith.constant 0 : index
    %c0_71 = arith.constant 0 : index
    %68 = vector.load %arg8[%c0_70, %c0_71] : memref<1x4xf32, #tpu.memory_space<vmem>>, vector<1x4xf32>
    %69 = vector.broadcast %68 : vector<1x4xf32> to vector<256x4xf32>
    %70 = arith.addf %67, %69 : vector<256x4xf32>
    %cst_72 = arith.constant 0.000000e+00 : f32
    %71 = vector.broadcast %cst_72 : f32 to vector<256x4xf32>
    %72 = arith.maximumf %70, %71 : vector<256x4xf32>
    %c0_73 = arith.constant 0 : index
    %c0_74 = arith.constant 0 : index
    %73 = vector.load %arg5[%c0_73, %c0_74] : memref<4x16xf32, #tpu.memory_space<vmem>>, vector<4x16xf32>
    %cst_75 = arith.constant dense<0.000000e+00> : vector<256x16xf32>
    %74 = tpu.matmul %72, %73, %cst_75 {dimension_numbers = #tpu.dot_dimension_numbers<[1], [0], [0], [1], [0, 0, 1, 1], [], []>} : vector<256x4xf32>, vector<4x16xf32>, vector<256x16xf32> -> vector<256x16xf32>
    %c0_76 = arith.constant 0 : index
    %c0_77 = arith.constant 0 : index
    %c0_78 = arith.constant 0 : index
    %75 = vector.load %arg2[%c0_76, %c0_77, %c0_78] : memref<1x256x4xf32, #tpu.memory_space<vmem>>, vector<1x256x4xf32>
    %76 = vector.shape_cast %75 : vector<1x256x4xf32> to vector<256x4xf32>
    %c0_79 = arith.constant 0 : index
    %c0_80 = arith.constant 0 : index
    %77 = vector.load %arg6[%c0_79, %c0_80] : memref<4x16xf32, #tpu.memory_space<vmem>>, vector<4x16xf32>
    %cst_81 = arith.constant dense<0.000000e+00> : vector<256x16xf32>
    %78 = tpu.matmul %76, %77, %cst_81 {dimension_numbers = #tpu.dot_dimension_numbers<[1], [0], [0], [1], [0, 0, 1, 1], [], []>} : vector<256x4xf32>, vector<4x16xf32>, vector<256x16xf32> -> vector<256x16xf32>
    %79 = arith.addf %74, %78 : vector<256x16xf32>
    %c0_82 = arith.constant 0 : index
    %c0_83 = arith.constant 0 : index
    %80 = vector.load %arg9[%c0_82, %c0_83] : memref<1x16xf32, #tpu.memory_space<vmem>>, vector<1x16xf32>
    %81 = vector.broadcast %80 : vector<1x16xf32> to vector<256x16xf32>
    %82 = arith.addf %79, %81 : vector<256x16xf32>
    %cst_84 = arith.constant 0.000000e+00 : f32
    %83 = vector.broadcast %cst_84 : f32 to vector<256x16xf32>
    %84 = arith.maximumf %82, %83 : vector<256x16xf32>
    %c0_85 = arith.constant 0 : index
    %c0_86 = arith.constant 0 : index
    %c0_87 = arith.constant 0 : index
    %85 = vector.load %arg10[%c0_85, %c0_86, %c0_87] : memref<1x256x16xf32, #tpu.memory_space<vmem>>, vector<1x256x16xf32>
    %86 = vector.shape_cast %85 : vector<1x256x16xf32> to vector<256x16xf32>
    %87 = vector.shape_cast %84 : vector<256x16xf32> to vector<1x256x16xf32>
    tpu.vector_store %arg10[%c0_85, %c0_86, %c0_87], %87 {strides = array<i32>} : memref<1x256x16xf32, #tpu.memory_space<vmem>>, vector<1x256x16xf32>,
    return
  }
  func.func @transform_0(%arg0: i32) -> (i32, i32, i32) {
    %c0_i32 = arith.constant 0 : i32
    %c0_i32_0 = arith.constant 0 : i32
    %c0_i32_1 = arith.constant 0 : i32
    return %arg0, %c0_i32, %c0_i32_0 : i32, i32, i32
  }
  func.func @transform_1(%arg0: i32) -> (i32, i32, i32) {
    %c0_i32 = arith.constant 0 : i32
    %c0_i32_0 = arith.constant 0 : i32
    %c0_i32_1 = arith.constant 0 : i32
    return %arg0, %c0_i32, %c0_i32_0 : i32, i32, i32
  }
  func.func @transform_2(%arg0: i32) -> (i32, i32) {
    %c0_i32 = arith.constant 0 : i32
    %c0_i32_0 = arith.constant 0 : i32
    %c0_i32_1 = arith.constant 0 : i32
    return %c0_i32, %c0_i32_0 : i32, i32
  }
  func.func @transform_3(%arg0: i32) -> (i32, i32, i32) {
    %c0_i32 = arith.constant 0 : i32
    %c0_i32_0 = arith.constant 0 : i32
    %c0_i32_1 = arith.constant 0 : i32
    %c0_i32_2 = arith.constant 0 : i32
    return %c0_i32, %c0_i32_0, %c0_i32_1 : i32, i32, i32
  }
  func.func @transform_4(%arg0: i32) -> (i32, i32) {
    %c0_i32 = arith.constant 0 : i32
    %c0_i32_0 = arith.constant 0 : i32
    %c0_i32_1 = arith.constant 0 : i32
    return %c0_i32, %c0_i32_0 : i32, i32
  }
  func.func @transform_5(%arg0: i32) -> (i32, i32) {
    %c0_i32 = arith.constant 0 : i32
    %c0_i32_0 = arith.constant 0 : i32
    %c0_i32_1 = arith.constant 0 : i32
    return %c0_i32, %c0_i32_0 : i32, i32
  }
  func.func @transform_6(%arg0: i32) -> (i32, i32) {
    %c0_i32 = arith.constant 0 : i32
    %c0_i32_0 = arith.constant 0 : i32
    %c0_i32_1 = arith.constant 0 : i32
    return %c0_i32, %c0_i32_0 : i32, i32
  }
  func.func @transform_7(%arg0: i32) -> (i32, i32) {
    %c0_i32 = arith.constant 0 : i32
    %c0_i32_0 = arith.constant 0 : i32
    %c0_i32_1 = arith.constant 0 : i32
    return %c0_i32, %c0_i32_0 : i32, i32
  }
  func.func @transform_8(%arg0: i32) -> (i32, i32) {
    %c0_i32 = arith.constant 0 : i32
    %c0_i32_0 = arith.constant 0 : i32
    %c0_i32_1 = arith.constant 0 : i32
    return %c0_i32, %c0_i32_0 : i32, i32
  }
  func.func @transform_9(%arg0: i32) -> (i32, i32, i32) {
    %c0_i32 = arith.constant 0 : i32
    %c0_i32_0 = arith.constant 0 : i32
    %c0_i32_1 = arith.constant 0 : i32
    return %arg0, %c0_i32, %c0_i32_0 : i32, i32, i32
  }
}

</mosaic_0001>

<bundles_post_ra>
// kernel: tpu_custom_call.1
= control target key start
LH: loop header
LB: loop body
LE: loop exit
PB: predicated region body
PF: predicated region fallthrough
CT: control target
= control target key end

     0   :  { %s6984_s30 = smov 0   ;;  %s8350_s0 = inlined_call_operand.vmem [shape: f32[2,256,4], index: 0, kind: input, shape index: {}]   ;;  %s8351_s1 = inlined_call_operand.vmem [shape: f32[2,256,4], index: 1, kind: input, shape index: {}]   ;;  %s8352_s2 = inlined_call_operand.vmem [shape: f32[4,4], index: 2, kind: input, shape index: {}]   ;;  %s8353_s3 = inlined_call_operand.vmem [shape: f32[9,4,4], index: 3, kind: input, shape index: {}]   ;;  %s8354_s4 = inlined_call_operand.vmem [shape: f32[4,16], index: 4, kind: input, shape index: {}]   ;;  %s8355_s5 = inlined_call_operand.vmem [shape: f32[4,16], index: 5, kind: input, shape index: {}]   ;;  %s8356_s6 = inlined_call_operand.vmem [shape: f32[1,4], index: 6, kind: input, shape index: {}]   ;;  %s8357_s7 = inlined_call_operand.vmem [shape: f32[1,4], index: 7, kind: input, shape index: {}]   ;;  %s8358_s8 = inlined_call_operand.vmem [shape: f32[1,16], index: 8, kind: input, shape index: {}]   ;;  %s8359_s9 = inlined_call_operand.vmem [shape: f32[2,256,16], index: 9, kind: output, shape index: {}]  }
   0x1 LB: > { %s5209_s10 = sadd.s32 4294967295, %s6931_s30   ;;  %p5213_p0 = scmp.ge.s32.totalorder %s6931_s30, 1  ;;  %s6931_s30 = sphi %s6984_s30, %s19_s30  }
   0x2   : > { %p297_p1 = scmp.lt.s32.totalorder %s6931_s30, 3 }
   0x4   : > { %p298_p2 = pnand %p5213_p0, %p297_p1 }
   0x6   : > { %301 = sbr.rel (%p298_p2) target bundleno = 1065 (0x429), region = 56 }
   0xd   : > { %v385_v0 = vld [vmem:[%s8352_s2] sm:$0xf]  ;;  %vm490_vm0 = vcmask 1043456   ;;  %p338_p3 = scmp.lt.s32.totalorder %s5209_s10, 1  ;;  %vm393_vm1 = vcmask 31744   ;;  %vm753_vm2 = vcmask 25600  }
   0xe   : > { %6028 = vmatprep.subr.msk.mxu0 %vm490_vm0, %v385_v0  ;;  %v6933_v33 = vmov 0.0   ;;  %v5254_v34 = vld [vmem:[%s8353_s3 + $0x4] sm:$0xf]  ;;  %v5355_v37 = vld [vmem:[%s8353_s3 + $0xc] sm:$0xf]  ;;  %vm5109_vm3 = vcmask 130048  }
   0xf   : > { %6029 = vmatpush3.msk.msra.mxu0 %vm490_vm0, %v385_v0  ;;  %s8435_s10 = smov (!%p338_p3, %s5209_s10), 1  ;;  %756 = vst.msk [vmem:[#allocation2 + $0x20] sm:$0xff] %vm393_vm1, %v6933_v33  ;;  %751 = vst.msk [vmem:[#allocation2] sm:$0xff] %vm393_vm1, %v6933_v33  ;;  %6228 = vmatprep.subr.msk.mxu1 %vm490_vm0, %v5355_v37  ;;  %v5389_v38 = vld [vmem:[%s8353_s3 + $0x10] sm:$0xf] }
  0x10   : > { %s6997_s13 = sshll.u32 %s8435_s10, 8  ;;  %752 = vst.msk [vmem:[#allocation2 + $0x8] sm:$0xff] %vm393_vm1, %v6933_v33  ;;  %755 = vst.msk [vmem:[#allocation2 + $0x18] sm:$0xff] %vm393_vm1, %v6933_v33  ;;  %6078 = vmatprep.subr.msk.mxu0 %vm490_vm0, %v5254_v34  ;;  %6229 = vmatpush3.msk.msra.mxu1 %vm490_vm0, %v5355_v37  ;;  %v871_v39 = vld [vmem:[%s8353_s3] sm:$0xf] }
  0x11   : > { %s7003_s16 = scalar_lea.vmem %s8350_s0, %s6997_s13  ;;  %758 = vst.msk [vmem:[#allocation2 + $0x30] sm:$0xff] %vm393_vm1, %v6933_v33  ;;  %759 = vst.msk [vmem:[#allocation2 + $0x38] sm:$0xff] %vm393_vm1, %v6933_v33  ;;  %6278 = vmatprep.subr.msk.mxu1 %vm490_vm0, %v5389_v38  ;;  %v7147_v40 = vld [vmem:[%s8356_s6] ss:$0 sm:$0xff]  ;;  %v7158_v54 = vld [vmem:[%s8353_s3 + $0x8] sm:$0xf]  ;;  %s7894_s22 = scalar_lea.vmem %s8351_s1, %s6997_s13 }
  0x12   : > { %v353_v1 = vld [vmem:[%s7003_s16] sm:$0xff]  ;;  %v354_v2 = vld [vmem:[%s7003_s16 + $0x8] sm:$0xff]  ;;  %v355_v3 = vld [vmem:[%s7003_s16 + $0x10] sm:$0xff]  ;;  %761 = vst.msk [vmem:[#allocation2 + $0x48] sm:$0xff] %vm393_vm1, %v6933_v33  ;;  %s8250_s11 = scalar_lea.vmem %s8359_s9, %s6997_s13 }
  0x13   : > { %6030 = vmatprep.mubr.msk.f32.mxu0 %vm393_vm1, %v353_v1  ;;  %v356_v4 = vld [vmem:[%s7003_s16 + $0x18] sm:$0xff]  ;;  %v357_v5 = vld [vmem:[%s7003_s16 + $0x20] sm:$0xff]  ;;  %v358_v6 = vld [vmem:[%s7003_s16 + $0x28] sm:$0xff]  ;;  %762 = vst.msk [vmem:[#allocation2 + $0x50] sm:$0xff] %vm393_vm1, %v6933_v33 }
  0x14   : > { %6031 = vmatmul.mubr.msk.f32.vlgmr.msra.gmra.mrb[0].mxu0 %vm393_vm1, %v354_v2  ;;  %v359_v7 = vld [vmem:[%s7003_s16 + $0x30] sm:$0xff]  ;;  %v360_v8 = vld [vmem:[%s7003_s16 + $0x38] sm:$0xff]  ;;  %v361_v9 = vld [vmem:[%s7003_s16 + $0x40] sm:$0xff]  ;;  %764 = vst.msk [vmem:[#allocation2 + $0x60] sm:$0xff] %vm393_vm1, %v6933_v33 }
  0x15   : > { %6033 = vmatprep.mubr.msk.f32.mxu0 %vm393_vm1, %v355_v3  ;;  %v362_v10 = vld [vmem:[%s7003_s16 + $0x48] sm:$0xff]  ;;  %v363_v11 = vld [vmem:[%s7003_s16 + $0x50] sm:$0xff]  ;;  %v364_v12 = vld [vmem:[%s7003_s16 + $0x58] sm:$0xff]  ;;  %765 = vst.msk [vmem:[#allocation2 + $0x68] sm:$0xff] %vm393_vm1, %v6933_v33  ;;  %6079 = vmatpush3.msk.msra.mxu0 %vm490_vm0, %v5254_v34 }
  0x16   : > { %v365_v13 = vld [vmem:[%s7003_s16 + $0x60] sm:$0xff]  ;;  %v366_v14 = vld [vmem:[%s7003_s16 + $0x68] sm:$0xff]  ;;  %v367_v15 = vld [vmem:[%s7003_s16 + $0x70] sm:$0xff]  ;;  %767 = vst.msk [vmem:[#allocation2 + $0x78] sm:$0xff] %vm393_vm1, %v6933_v33  ;;  %6128 = vmatprep.subr.msk.mxu0 %vm490_vm0, %v871_v39 }
  0x17   : > { %v368_v16 = vld [vmem:[%s7003_s16 + $0x78] sm:$0xff]  ;;  %v369_v17 = vld [vmem:[%s7003_s16 + $0x80] sm:$0xff]  ;;  %v370_v18 = vld [vmem:[%s7003_s16 + $0x88] sm:$0xff]  ;;  %768 = vst.msk [vmem:[#allocation2 + $0x80] sm:$0xff] %vm393_vm1, %v6933_v33 }
  0x18   : > { %6034 = vmatmul.mubr.msk.f32.gmra.mrb[2].mxu0 %vm393_vm1, %v356_v4  ;;  %v371_v19 = vld [vmem:[%s7003_s16 + $0x90] sm:$0xff]  ;;  %v372_v20 = vld [vmem:[%s7003_s16 + $0x98] sm:$0xff]  ;;  %v373_v21 = vld [vmem:[%s7003_s16 + $0xa0] sm:$0xff]  ;;  %770 = vst.msk [vmem:[#allocation2 + $0x90] sm:$0xff] %vm393_vm1, %v6933_v33 }
  0x19   : > { %6036 = vmatprep.mubr.msk.f32.mxu0 %vm393_vm1, %v357_v5  ;;  %v374_v22 = vld [vmem:[%s7003_s16 + $0xa8] sm:$0xff]  ;;  %v375_v23 = vld [vmem:[%s7003_s16 + $0xb0] sm:$0xff]  ;;  %v376_v24 = vld [vmem:[%s7003_s16 + $0xb8] sm:$0xff]  ;;  %771 = vst.msk [vmem:[#allocation2 + $0x98] sm:$0xff] %vm393_vm1, %v6933_v33 }
  0x1a   : > { %v377_v25 = vld [vmem:[%s7003_s16 + $0xc0] sm:$0xff]  ;;  %v378_v26 = vld [vmem:[%s7003_s16 + $0xc8] sm:$0xff]  ;;  %v379_v27 = vld [vmem:[%s7003_s16 + $0xd0] sm:$0xff]  ;;  %773 = vst.msk [vmem:[#allocation2 + $0xa8] sm:$0xff] %vm393_vm1, %v6933_v33 }
  0x1b   : > { %v380_v28 = vld [vmem:[%s7003_s16 + $0xd8] sm:$0xff]  ;;  %v381_v29 = vld [vmem:[%s7003_s16 + $0xe0] sm:$0xff]  ;;  %v382_v30 = vld [vmem:[%s7003_s16 + $0xe8] sm:$0xff]  ;;  %774 = vst.msk [vmem:[#allocation2 + $0xb0] sm:$0xff] %vm393_vm1, %v6933_v33 }
  0x1c   : > { %6037 = vmatmul.mubr.msk.f32.gmra.mrb[4].mxu0 %vm393_vm1, %v358_v6  ;;  %v383_v31 = vld [vmem:[%s7003_s16 + $0xf0] sm:$0xff]  ;;  %v384_v32 = vld [vmem:[%s7003_s16 + $0xf8] sm:$0xff]  ;;  %776 = vst.msk [vmem:[#allocation2 + $0xc0] sm:$0xff] %vm393_vm1, %v6933_v33  ;;  %777 = vst.msk [vmem:[#allocation2 + $0xc8] sm:$0xff] %vm393_vm1, %v6933_v33 }
  0x1d   : > { %6039 = vmatprep.mubr.msk.f32.mxu0 %vm393_vm1, %v359_v7  ;;  %779 = vst.msk [vmem:[#allocation2 + $0xd8] sm:$0xff] %vm393_vm1, %v6933_v33  ;;  %780 = vst.msk [vmem:[#allocation2 + $0xe0] sm:$0xff] %vm393_vm1, %v6933_v33  ;;  %v872_v35 = vld [vmem:[#allocation2 + $0x1] sm:$0xff]  ;;  %v7185_v4 = vld [vmem:[%s8353_s3 + $0x14] sm:$0xf] }
  0x1e   : > { %782 = vst.msk [vmem:[#allocation2 + $0xf0] sm:$0xff] %vm393_vm1, %v6933_v33  ;;  %783 = vst.msk [vmem:[#allocation2 + $0xf8] sm:$0xff] %vm393_vm1, %v6933_v33 }
  0x1f   : > { %785 = vst.msk [vmem:[#allocation2 + $0x108] sm:$0xff] %vm393_vm1, %v6933_v33  ;;  %786 = vst.msk [vmem:[#allocation2 + $0x110] sm:$0xff] %vm393_vm1, %v6933_v33 }
  0x20   : > { %6040 = vmatmul.mubr.msk.f32.gmra.mrb[6].mxu0 %vm393_vm1, %v360_v8  ;;  %788 = vst.msk [vmem:[#allocation2 + $0x120] sm:$0xff] %vm393_vm1, %v6933_v33  ;;  %789 = vst.msk [vmem:[#allocation2 + $0x128] sm:$0xff] %vm393_vm1, %v6933_v33 }
  0x21   : > { %6042 = vmatprep.mubr.msk.f32.mxu0 %vm393_vm1, %v361_v9  ;;  %791 = vst.msk [vmem:[#allocation2 + $0x138] sm:$0xff] %vm393_vm1, %v6933_v33  ;;  %792 = vst.msk [vmem:[#allocation2 + $0x140] sm:$0xff] %vm393_vm1, %v6933_v33 }
  0x22   : > { %794 = vst.msk [vmem:[#allocation2 + $0x150] sm:$0xff] %vm393_vm1, %v6933_v33  ;;  %795 = vst.msk [vmem:[#allocation2 + $0x158] sm:$0xff] %vm393_vm1, %v6933_v33 }
  0x23   : > { %797 = vst.msk [vmem:[#allocation2 + $0x168] sm:$0xff] %vm393_vm1, %v6933_v33  ;;  %798 = vst.msk [vmem:[#allocation2 + $0x170] sm:$0xff] %vm393_vm1, %v6933_v33 }
  0x24   : > { %6043 = vmatmul.mubr.msk.f32.gmra.mrb[8].mxu0 %vm393_vm1, %v362_v10  ;;  %800 = vst.msk [vmem:[#allocation2 + $0x180] sm:$0xff] %vm393_vm1, %v6933_v33  ;;  %801 = vst.msk [vmem:[#allocation2 + $0x188] sm:$0xff] %vm393_vm1, %v6933_v33 }
  0x25   : > { %6045 = vmatprep.mubr.msk.f32.mxu0 %vm393_vm1, %v363_v11  ;;  %803 = vst.msk [vmem:[#allocation2 + $0x198] sm:$0xff] %vm393_vm1, %v6933_v33  ;;  %804 = vst.msk [vmem:[#allocation2 + $0x1a0] sm:$0xff] %vm393_vm1, %v6933_v33 }
  0x26   : > { %757 = vst.msk [vmem:[#allocation2 + $0x28] sm:$0x3] %vm753_vm2, %v6933_v33  ;;  %754 = vst.msk [vmem:[#allocation2 + $0x10] sm:$0x3] %vm753_vm2, %v6933_v33 }
  0x27   : > { %760 = vst.msk [vmem:[#allocation2 + $0x40] sm:$0x3] %vm753_vm2, %v6933_v33  ;;  %763 = vst.msk [vmem:[#allocation2 + $0x58] sm:$0x3] %vm753_vm2, %v6933_v33 }
  0x28   : > { %6046 = vmatmul.mubr.msk.f32.gmra.mrb[10].mxu0 %vm393_vm1, %v364_v12  ;;  %766 = vst.msk [vmem:[#allocation2 + $0x70] sm:$0x3] %vm753_vm2, %v6933_v33  ;;  %769 = vst.msk [vmem:[#allocation2 + $0x88] sm:$0x3] %vm753_vm2, %v6933_v33 }
  0x29   : > { %6048 = vmatprep.mubr.msk.f32.mxu0 %vm393_vm1, %v365_v13  ;;  %772 = vst.msk [vmem:[#allocation2 + $0xa0] sm:$0x3] %vm753_vm2, %v6933_v33  ;;  %775 = vst.msk [vmem:[#allocation2 + $0xb8] sm:$0x3] %vm753_vm2, %v6933_v33 }
  0x2a   : > { %778 = vst.msk [vmem:[#allocation2 + $0xd0] sm:$0x3] %vm753_vm2, %v6933_v33  ;;  %781 = vst.msk [vmem:[#allocation2 + $0xe8] sm:$0x3] %vm753_vm2, %v6933_v33 }
  0x2b   : > { %784 = vst.msk [vmem:[#allocation2 + $0x100] sm:$0x3] %vm753_vm2, %v6933_v33  ;;  %787 = vst.msk [vmem:[#allocation2 + $0x118] sm:$0x3] %vm753_vm2, %v6933_v33 }
  0x2c   : > { %6049 = vmatmul.mubr.msk.f32.gmra.mrb[12].mxu0 %vm393_vm1, %v366_v14  ;;  %790 = vst.msk [vmem:[#allocation2 + $0x130] sm:$0x3] %vm753_vm2, %v6933_v33  ;;  %793 = vst.msk [vmem:[#allocation2 + $0x148] sm:$0x3] %vm753_vm2, %v6933_v33 }
  0x2d   : > { %6051 = vmatprep.mubr.msk.f32.mxu0 %vm393_vm1, %v367_v15  ;;  %796 = vst.msk [vmem:[#allocation2 + $0x160] sm:$0x3] %vm753_vm2, %v6933_v33  ;;  %799 = vst.msk [vmem:[#allocation2 + $0x178] sm:$0x3] %vm753_vm2, %v6933_v33  ;;  %v873_v36 = vld [vmem:[#allocation2 + $0x9] sm:$0xff] }
  0x2e   : > { %802 = vst.msk [vmem:[#allocation2 + $0x190] sm:$0x3] %vm753_vm2, %v6933_v33  ;;  %805 = vst.msk [vmem:[#allocation2 + $0x1a8] sm:$0x3] %vm753_vm2, %v6933_v33 }
  0x30   : > { %6052 = vmatmul.mubr.msk.f32.gmra.mrb[14].mxu0 %vm393_vm1, %v368_v16 }
  0x31   : > { %6054 = vmatprep.mubr.msk.f32.mxu0 %vm393_vm1, %v369_v17 }
  0x34   : > { %6055 = vmatmul.mubr.msk.f32.gmra.mrb[16].mxu0 %vm393_vm1, %v370_v18 }
  0x35   : > { %6057 = vmatprep.mubr.msk.f32.mxu0 %vm393_vm1, %v371_v19 }
  0x38   : > { %6058 = vmatmul.mubr.msk.f32.gmra.mrb[18].mxu0 %vm393_vm1, %v372_v20 }
  0x39   : > { %6060 = vmatprep.mubr.msk.f32.mxu0 %vm393_vm1, %v373_v21 }
  0x3c   : > { %6061 = vmatmul.mubr.msk.f32.gmra.mrb[20].mxu0 %vm393_vm1, %v374_v22 }
  0x3d   : > { %6063 = vmatprep.mubr.msk.f32.mxu0 %vm393_vm1, %v375_v23 }
  0x40   : > { %6064 = vmatmul.mubr.msk.f32.gmra.mrb[22].mxu0 %vm393_vm1, %v376_v24 }
  0x41   : > { %6066 = vmatprep.mubr.msk.f32.mxu0 %vm393_vm1, %v377_v25 }
  0x44   : > { %6067 = vmatmul.mubr.msk.f32.gmra.mrb[24].mxu0 %vm393_vm1, %v378_v26 }
  0x45   : > { %6069 = vmatprep.mubr.msk.f32.mxu0 %vm393_vm1, %v379_v27 }
  0x48   : > { %6070 = vmatmul.mubr.msk.f32.gmra.mrb[26].mxu0 %vm393_vm1, %v380_v28 }
  0x49   : > { %6072 = vmatprep.mubr.msk.f32.mxu0 %vm393_vm1, %v381_v29 }
  0x4c   : > { %6073 = vmatmul.mubr.msk.f32.gmra.mrb[28].mxu0 %vm393_vm1, %v382_v30 }
  0x4d   : > { %6075 = vmatprep.mubr.msk.f32.mxu0 %vm393_vm1, %v383_v31 }
  0x50   : > { %6076 = vmatmul.mubr.msk.f32.gmra.mrb[30].mxu0 %vm393_vm1, %v384_v32 }
  0x51   : > { %6080 = vmatprep.mubr.msk.f32.mxu0 %vm393_vm1, %v872_v35 }
  0x54   : > { %6081 = vmatmul.mubr.msk.f32.vlgmr.msra.gmra.mrb[32].mxu0 %vm393_vm1, %v873_v36 }
  0x55   : > { %6129 = vmatpush3.msk.msra.mxu0 %vm490_vm0, %v871_v39 }
  0x56   : > { %6178 = vmatprep.subr.msk.mxu0 %vm490_vm0, %v7158_v54 }
  0xe7   : > { %v6032_v41 = vpop.f32.mrb[0].mxu0 }
  0xe8   : > { %v566_v42 = vadd.f32 %v6032_v41, %v7147_v40  ;;  %v560_v43 = vpop.f32.mrb[1].mxu0 }
  0xe9   : > { %v561_v44 = vadd.f32 %v7147_v40, %v560_v43 }
  0xea   : > { %v720_v45 = vmax.f32 %v566_v42, 0.0 }
  0xeb   : > { %v719_v46 = vmax.f32 %v561_v44, 0.0  ;;  %v6035_v47 = vpop.f32.mrb[2].mxu0 }
  0xec   : > { %808 = vst.msk [vmem:[#allocation2 + $0x21] sm:$0xff] %vm393_vm1, %v720_v45  ;;  %v576_v48 = vadd.f32 %v6035_v47, %v7147_v40  ;;  %v570_v49 = vpop.f32.mrb[3].mxu0 }
  0xed   : > { %807 = vst.msk [vmem:[#allocation2 + $0x19] sm:$0xff] %vm393_vm1, %v719_v46  ;;  %v571_v50 = vadd.f32 %v7147_v40, %v570_v49 }
  0xee   : > { %v722_v51 = vmax.f32 %v576_v48, 0.0 }
  0xef   : > { %v721_v52 = vmax.f32 %v571_v50, 0.0  ;;  %v6038_v53 = vpop.f32.mrb[4].mxu0 }
  0xf0   : > { %810 = vst.msk [vmem:[#allocation2 + $0x39] sm:$0xff] %vm393_vm1, %v722_v51  ;;  %v586_v55 = vadd.f32 %v6038_v53, %v7147_v40  ;;  %v580_v56 = vpop.f32.mrb[5].mxu0 }
  0xf1   : > { %809 = vst.msk [vmem:[#allocation2 + $0x31] sm:$0xff] %vm393_vm1, %v721_v52  ;;  %v581_v57 = vadd.f32 %v7147_v40, %v580_v56 }
  0xf2   : > { %v724_v58 = vmax.f32 %v586_v55, 0.0 }
  0xf3   : > { %v723_v59 = vmax.f32 %v581_v57, 0.0  ;;  %v6041_v60 = vpop.f32.mrb[6].mxu0  ;;  %v7180_v3 = vld [vmem:[#allocation2 + $0x21] sm:$0xff] }
  0xf4   : > { %812 = vst.msk [vmem:[#allocation2 + $0x51] sm:$0xff] %vm393_vm1, %v724_v58  ;;  %v596_v61 = vadd.f32 %v6041_v60, %v7147_v40  ;;  %v590_v62 = vpop.f32.mrb[7].mxu0  ;;  %v7168_v63 = vld [vmem:[#allocation2 + $0x19] sm:$0xff] }
  0xf5   : > { %v7170_v0 = vld [vmem:[#allocation2 + $0x18] sm:$0xff]  ;;  %v7172_v1 = vld [vmem:[#allocation2 + $0x20] sm:$0xff]  ;;  %811 = vst.msk [vmem:[#allocation2 + $0x49] sm:$0xff] %vm393_vm1, %v723_v59  ;;  %v591_v2 = vadd.f32 %v7147_v40, %v590_v62  ;;  %6083 = vmatprep.mubr.msk.f32.mxu0 %vm393_vm1, %v7168_v63 }
  0xf6   : > { %6230 = vmatprep.mubr.msk.f32.mxu1 %vm393_vm1, %v7170_v0  ;;  %v726_v5 = vmax.f32 %v596_v61, 0.0  ;;  %6084 = vmatmul.mubr.msk.f32.gmra.mrb[34].mxu0 %vm393_vm1, %v7180_v3 }
  0xf7   : > { %6231 = vmatmul.mubr.msk.f32.vlgmr.msra.gmra.mrb[0].mxu1 %vm393_vm1, %v7172_v1  ;;  %v725_v6 = vmax.f32 %v591_v2, 0.0  ;;  %v6044_v7 = vpop.f32.mrb[8].mxu0  ;;  %v7208_v14 = vld [vmem:[#allocation2 + $0x39] sm:$0xff] }
  0xf8   : > { %6279 = vmatpush3.msk.msra.mxu1 %vm490_vm0, %v5389_v38  ;;  %814 = vst.msk [vmem:[#allocation2 + $0x69] sm:$0xff] %vm393_vm1, %v726_v5  ;;  %v606_v8 = vadd.f32 %v6044_v7, %v7147_v40  ;;  %v600_v9 = vpop.f32.mrb[9].mxu0  ;;  %v7194_v10 = vld [vmem:[#allocation2 + $0x31] sm:$0xff] }
  0xf9   : > { %v7196_v11 = vld [vmem:[#allocation2 + $0x30] sm:$0xff]  ;;  %v7198_v12 = vld [vmem:[#allocation2 + $0x38] sm:$0xff]  ;;  %6328 = vmatprep.subr.msk.mxu1 %vm490_vm0, %v7185_v4  ;;  %813 = vst.msk [vmem:[#allocation2 + $0x61] sm:$0xff] %vm393_vm1, %v725_v6  ;;  %v601_v13 = vadd.f32 %v7147_v40, %v600_v9  ;;  %6086 = vmatprep.mubr.msk.f32.mxu0 %vm393_vm1, %v7194_v10 }
  0xfa   : > { %6233 = vmatprep.mubr.msk.f32.mxu1 %vm393_vm1, %v7196_v11  ;;  %v728_v15 = vmax.f32 %v606_v8, 0.0  ;;  %6087 = vmatmul.mubr.msk.f32.gmra.mrb[36].mxu0 %vm393_vm1, %v7208_v14 }
  0xfb   : > { %6234 = vmatmul.mubr.msk.f32.gmra.mrb[2].mxu1 %vm393_vm1, %v7198_v12  ;;  %v727_v16 = vmax.f32 %v601_v13, 0.0  ;;  %v6047_v17 = vpop.f32.mrb[10].mxu0  ;;  %v7228_v24 = vld [vmem:[#allocation2 + $0x51] sm:$0xff] }
  0xfc   : > { %816 = vst.msk [vmem:[#allocation2 + $0x81] sm:$0xff] %vm393_vm1, %v728_v15  ;;  %v616_v18 = vadd.f32 %v6047_v17, %v7147_v40  ;;  %v610_v19 = vpop.f32.mrb[11].mxu0  ;;  %v7216_v20 = vld [vmem:[#allocation2 + $0x49] sm:$0xff] }
  0xfd   : > { %v7218_v21 = vld [vmem:[#allocation2 + $0x48] sm:$0xff]  ;;  %v7220_v22 = vld [vmem:[#allocation2 + $0x50] sm:$0xff]  ;;  %815 = vst.msk [vmem:[#allocation2 + $0x79] sm:$0xff] %vm393_vm1, %v727_v16  ;;  %v611_v23 = vadd.f32 %v7147_v40, %v610_v19  ;;  %6089 = vmatprep.mubr.msk.f32.mxu0 %vm393_vm1, %v7216_v20 }
  0xfe   : > { %6236 = vmatprep.mubr.msk.f32.mxu1 %vm393_vm1, %v7218_v21  ;;  %v730_v25 = vmax.f32 %v616_v18, 0.0  ;;  %6090 = vmatmul.mubr.msk.f32.gmra.mrb[38].mxu0 %vm393_vm1, %v7228_v24 }
  0xff   : > { %6237 = vmatmul.mubr.msk.f32.gmra.mrb[4].mxu1 %vm393_vm1, %v7220_v22  ;;  %v729_v26 = vmax.f32 %v611_v23, 0.0  ;;  %v6050_v27 = vpop.f32.mrb[12].mxu0  ;;  %v7248_v34 = vld [vmem:[#allocation2 + $0x69] sm:$0xff] }
 0x100   : > { %818 = vst.msk [vmem:[#allocation2 + $0x99] sm:$0xff] %vm393_vm1, %v730_v25  ;;  %v626_v28 = vadd.f32 %v6050_v27, %v7147_v40  ;;  %v620_v29 = vpop.f32.mrb[13].mxu0  ;;  %v7236_v30 = vld [vmem:[#allocation2 + $0x61] sm:$0xff] }
 0x101   : > { %v7238_v31 = vld [vmem:[#allocation2 + $0x60] sm:$0xff]  ;;  %v7240_v32 = vld [vmem:[#allocation2 + $0x68] sm:$0xff]  ;;  %817 = vst.msk [vmem:[#allocation2 + $0x91] sm:$0xff] %vm393_vm1, %v729_v26  ;;  %v621_v33 = vadd.f32 %v7147_v40, %v620_v29  ;;  %6092 = vmatprep.mubr.msk.f32.mxu0 %vm393_vm1, %v7236_v30 }
 0x102   : > { %6239 = vmatprep.mubr.msk.f32.mxu1 %vm393_vm1, %v7238_v31  ;;  %v732_v35 = vmax.f32 %v626_v28, 0.0  ;;  %6093 = vmatmul.mubr.msk.f32.gmra.mrb[40].mxu0 %vm393_vm1, %v7248_v34 }
 0x103   : > { %6240 = vmatmul.mubr.msk.f32.gmra.mrb[6].mxu1 %vm393_vm1, %v7240_v32  ;;  %v731_v36 = vmax.f32 %v621_v33, 0.0  ;;  %v6053_v37 = vpop.f32.mrb[14].mxu0  ;;  %v7268_v45 = vld [vmem:[#allocation2 + $0x81] sm:$0xff] }
 0x104   : > { %820 = vst.msk [vmem:[#allocation2 + $0xb1] sm:$0xff] %vm393_vm1, %v732_v35  ;;  %v636_v38 = vadd.f32 %v6053_v37, %v7147_v40  ;;  %v630_v39 = vpop.f32.mrb[15].mxu0  ;;  %v7256_v41 = vld [vmem:[#allocation2 + $0x79] sm:$0xff] }
 0x105   : > { %v7258_v42 = vld [vmem:[#allocation2 + $0x78] sm:$0xff]  ;;  %v7260_v43 = vld [vmem:[#allocation2 + $0x80] sm:$0xff]  ;;  %819 = vst.msk [vmem:[#allocation2 + $0xa9] sm:$0xff] %vm393_vm1, %v731_v36  ;;  %v631_v44 = vadd.f32 %v7147_v40, %v630_v39  ;;  %6095 = vmatprep.mubr.msk.f32.mxu0 %vm393_vm1, %v7256_v41 }
 0x106   : > { %6242 = vmatprep.mubr.msk.f32.mxu1 %vm393_vm1, %v7258_v42  ;;  %v734_v46 = vmax.f32 %v636_v38, 0.0  ;;  %6096 = vmatmul.mubr.msk.f32.gmra.mrb[42].mxu0 %vm393_vm1, %v7268_v45 }
 0x107   : > { %6243 = vmatmul.mubr.msk.f32.gmra.mrb[8].mxu1 %vm393_vm1, %v7260_v43  ;;  %v733_v47 = vmax.f32 %v631_v44, 0.0  ;;  %v6056_v48 = vpop.f32.mrb[16].mxu0  ;;  %v7288_v56 = vld [vmem:[#allocation2 + $0x99] sm:$0xff] }
 0x108   : > { %822 = vst.msk [vmem:[#allocation2 + $0xc9] sm:$0xff] %vm393_vm1, %v734_v46  ;;  %v646_v49 = vadd.f32 %v6056_v48, %v7147_v40  ;;  %v640_v50 = vpop.f32.mrb[17].mxu0  ;;  %v7276_v51 = vld [vmem:[#allocation2 + $0x91] sm:$0xff] }
 0x109   : > { %v7278_v52 = vld [vmem:[#allocation2 + $0x90] sm:$0xff]  ;;  %v7280_v53 = vld [vmem:[#allocation2 + $0x98] sm:$0xff]  ;;  %821 = vst.msk [vmem:[#allocation2 + $0xc1] sm:$0xff] %vm393_vm1, %v733_v47  ;;  %v641_v55 = vadd.f32 %v7147_v40, %v640_v50  ;;  %6098 = vmatprep.mubr.msk.f32.mxu0 %vm393_vm1, %v7276_v51 }
 0x10a   : > { %6245 = vmatprep.mubr.msk.f32.mxu1 %vm393_vm1, %v7278_v52  ;;  %v736_v57 = vmax.f32 %v646_v49, 0.0  ;;  %6099 = vmatmul.mubr.msk.f32.gmra.mrb[44].mxu0 %vm393_vm1, %v7288_v56 }
 0x10b   : > { %6246 = vmatmul.mubr.msk.f32.gmra.mrb[10].mxu1 %vm393_vm1, %v7280_v53  ;;  %v735_v58 = vmax.f32 %v641_v55, 0.0  ;;  %v6059_v59 = vpop.f32.mrb[18].mxu0  ;;  %v7308_v7 = vld [vmem:[#allocation2 + $0xb1] sm:$0xff] }
 0x10c   : > { %824 = vst.msk [vmem:[#allocation2 + $0xe1] sm:$0xff] %vm393_vm1, %v736_v57  ;;  %v656_v60 = vadd.f32 %v6059_v59, %v7147_v40  ;;  %v650_v61 = vpop.f32.mrb[19].mxu0  ;;  %v7296_v62 = vld [vmem:[#allocation2 + $0xa9] sm:$0xff] }
 0x10d   : > { %v7298_v2 = vld [vmem:[#allocation2 + $0xa8] sm:$0xff]  ;;  %v7300_v5 = vld [vmem:[#allocation2 + $0xb0] sm:$0xff]  ;;  %823 = vst.msk [vmem:[#allocation2 + $0xd9] sm:$0xff] %vm393_vm1, %v735_v58  ;;  %v651_v6 = vadd.f32 %v7147_v40, %v650_v61  ;;  %6101 = vmatprep.mubr.msk.f32.mxu0 %vm393_vm1, %v7296_v62 }
 0x10e   : > { %6248 = vmatprep.mubr.msk.f32.mxu1 %vm393_vm1, %v7298_v2  ;;  %v738_v8 = vmax.f32 %v656_v60, 0.0  ;;  %6102 = vmatmul.mubr.msk.f32.gmra.mrb[46].mxu0 %vm393_vm1, %v7308_v7 }
 0x10f   : > { %6249 = vmatmul.mubr.msk.f32.gmra.mrb[12].mxu1 %vm393_vm1, %v7300_v5  ;;  %v737_v9 = vmax.f32 %v651_v6, 0.0  ;;  %v6062_v13 = vpop.f32.mrb[20].mxu0  ;;  %v7328_v25 = vld [vmem:[#allocation2 + $0xc9] sm:$0xff] }
 0x110   : > { %826 = vst.msk [vmem:[#allocation2 + $0xf9] sm:$0xff] %vm393_vm1, %v738_v8  ;;  %v666_v15 = vadd.f32 %v6062_v13, %v7147_v40  ;;  %v660_v16 = vpop.f32.mrb[21].mxu0  ;;  %v7316_v17 = vld [vmem:[#allocation2 + $0xc1] sm:$0xff] }
 0x111   : > { %v7318_v18 = vld [vmem:[#allocation2 + $0xc0] sm:$0xff]  ;;  %v7320_v19 = vld [vmem:[#allocation2 + $0xc8] sm:$0xff]  ;;  %825 = vst.msk [vmem:[#allocation2 + $0xf1] sm:$0xff] %vm393_vm1, %v737_v9  ;;  %v661_v23 = vadd.f32 %v7147_v40, %v660_v16  ;;  %6104 = vmatprep.mubr.msk.f32.mxu0 %vm393_vm1, %v7316_v17 }
 0x112   : > { %6251 = vmatprep.mubr.msk.f32.mxu1 %vm393_vm1, %v7318_v18  ;;  %v740_v26 = vmax.f32 %v666_v15, 0.0  ;;  %6105 = vmatmul.mubr.msk.f32.gmra.mrb[48].mxu0 %vm393_vm1, %v7328_v25 }
 0x113   : > { %6252 = vmatmul.mubr.msk.f32.gmra.mrb[14].mxu1 %vm393_vm1, %v7320_v19  ;;  %v739_v27 = vmax.f32 %v661_v23, 0.0  ;;  %v6065_v28 = vpop.f32.mrb[22].mxu0  ;;  %v7348_v39 = vld [vmem:[#allocation2 + $0xe1] sm:$0xff] }
 0x114   : > { %828 = vst.msk [vmem:[#allocation2 + $0x111] sm:$0xff] %vm393_vm1, %v740_v26  ;;  %v676_v29 = vadd.f32 %v6065_v28, %v7147_v40  ;;  %v670_v33 = vpop.f32.mrb[23].mxu0  ;;  %v7336_v35 = vld [vmem:[#allocation2 + $0xd9] sm:$0xff] }
 0x115   : > { %v7338_v36 = vld [vmem:[#allocation2 + $0xd8] sm:$0xff]  ;;  %v7340_v37 = vld [vmem:[#allocation2 + $0xe0] sm:$0xff]  ;;  %827 = vst.msk [vmem:[#allocation2 + $0x109] sm:$0xff] %vm393_vm1, %v739_v27  ;;  %v671_v38 = vadd.f32 %v7147_v40, %v670_v33  ;;  %6107 = vmatprep.mubr.msk.f32.mxu0 %vm393_vm1, %v7336_v35 }
 0x116   : > { %6254 = vmatprep.mubr.msk.f32.mxu1 %vm393_vm1, %v7338_v36  ;;  %v742_v44 = vmax.f32 %v676_v29, 0.0  ;;  %6108 = vmatmul.mubr.msk.f32.gmra.mrb[50].mxu0 %vm393_vm1, %v7348_v39 }
 0x117   : > { %6255 = vmatmul.mubr.msk.f32.gmra.mrb[16].mxu1 %vm393_vm1, %v7340_v37  ;;  %v741_v46 = vmax.f32 %v671_v38, 0.0  ;;  %v6068_v47 = vpop.f32.mrb[24].mxu0  ;;  %v7368_v59 = vld [vmem:[#allocation2 + $0xf9] sm:$0xff] }
 0x118   : > { %830 = vst.msk [vmem:[#allocation2 + $0x129] sm:$0xff] %vm393_vm1, %v742_v44  ;;  %v686_v48 = vadd.f32 %v6068_v47, %v7147_v40  ;;  %v680_v49 = vpop.f32.mrb[25].mxu0  ;;  %v7356_v50 = vld [vmem:[#allocation2 + $0xf1] sm:$0xff] }
 0x119   : > { %v7358_v55 = vld [vmem:[#allocation2 + $0xf0] sm:$0xff]  ;;  %v7360_v57 = vld [vmem:[#allocation2 + $0xf8] sm:$0xff]  ;;  %829 = vst.msk [vmem:[#allocation2 + $0x121] sm:$0xff] %vm393_vm1, %v741_v46  ;;  %v681_v58 = vadd.f32 %v7147_v40, %v680_v49  ;;  %6110 = vmatprep.mubr.msk.f32.mxu0 %vm393_vm1, %v7356_v50 }
 0x11a   : > { %6257 = vmatprep.mubr.msk.f32.mxu1 %vm393_vm1, %v7358_v55  ;;  %v744_v60 = vmax.f32 %v686_v48, 0.0  ;;  %6111 = vmatmul.mubr.msk.f32.gmra.mrb[52].mxu0 %vm393_vm1, %v7368_v59 }
 0x11b   : > { %6258 = vmatmul.mubr.msk.f32.gmra.mrb[18].mxu1 %vm393_vm1, %v7360_v57  ;;  %v743_v61 = vmax.f32 %v681_v58, 0.0  ;;  %v6071_v6 = vpop.f32.mrb[26].mxu0  ;;  %v7388_v26 = vld [vmem:[#allocation2 + $0x111] sm:$0xff] }
 0x11c   : > { %832 = vst.msk [vmem:[#allocation2 + $0x141] sm:$0xff] %vm393_vm1, %v744_v60  ;;  %v696_v8 = vadd.f32 %v6071_v6, %v7147_v40  ;;  %v690_v9 = vpop.f32.mrb[27].mxu0  ;;  %v7376_v13 = vld [vmem:[#allocation2 + $0x109] sm:$0xff] }
 0x11d   : > { %v7378_v15 = vld [vmem:[#allocation2 + $0x108] sm:$0xff]  ;;  %v7380_v16 = vld [vmem:[#allocation2 + $0x110] sm:$0xff]  ;;  %831 = vst.msk [vmem:[#allocation2 + $0x139] sm:$0xff] %vm393_vm1, %v743_v61  ;;  %v691_v23 = vadd.f32 %v7147_v40, %v690_v9  ;;  %6113 = vmatprep.mubr.msk.f32.mxu0 %vm393_vm1, %v7376_v13 }
 0x11e   : > { %6260 = vmatprep.mubr.msk.f32.mxu1 %vm393_vm1, %v7378_v15  ;;  %v746_v27 = vmax.f32 %v696_v8, 0.0  ;;  %6114 = vmatmul.mubr.msk.f32.gmra.mrb[54].mxu0 %vm393_vm1, %v7388_v26 }
 0x11f   : > { %6261 = vmatmul.mubr.msk.f32.gmra.mrb[20].mxu1 %vm393_vm1, %v7380_v16  ;;  %v745_v28 = vmax.f32 %v691_v23, 0.0  ;;  %v6074_v29 = vpop.f32.mrb[28].mxu0  ;;  %v7408_v49 = vld [vmem:[#allocation2 + $0x129] sm:$0xff] }
 0x120   : > { %834 = vst.msk [vmem:[#allocation2 + $0x159] sm:$0xff] %vm393_vm1, %v746_v27  ;;  %v706_v33 = vadd.f32 %v6074_v29, %v7147_v40  ;;  %v700_v38 = vpop.f32.mrb[29].mxu0  ;;  %v7396_v44 = vld [vmem:[#allocation2 + $0x121] sm:$0xff] }
 0x121   : > { %v7398_v46 = vld [vmem:[#allocation2 + $0x120] sm:$0xff]  ;;  %v7400_v47 = vld [vmem:[#allocation2 + $0x128] sm:$0xff]  ;;  %833 = vst.msk [vmem:[#allocation2 + $0x151] sm:$0xff] %vm393_vm1, %v745_v28  ;;  %v701_v48 = vadd.f32 %v7147_v40, %v700_v38  ;;  %6116 = vmatprep.mubr.msk.f32.mxu0 %vm393_vm1, %v7396_v44 }
 0x122   : > { %6263 = vmatprep.mubr.msk.f32.mxu1 %vm393_vm1, %v7398_v46  ;;  %v748_v58 = vmax.f32 %v706_v33, 0.0  ;;  %6117 = vmatmul.mubr.msk.f32.gmra.mrb[56].mxu0 %vm393_vm1, %v7408_v49 }
 0x123   : > { %6264 = vmatmul.mubr.msk.f32.gmra.mrb[22].mxu1 %vm393_vm1, %v7400_v47  ;;  %v747_v60 = vmax.f32 %v701_v48, 0.0  ;;  %v6077_v61 = vpop.f32.mrb[30].mxu0  ;;  %v7428_v29 = vld [vmem:[#allocation2 + $0x141] sm:$0xff] }
 0x124   : > { %836 = vst.msk [vmem:[#allocation2 + $0x171] sm:$0xff] %vm393_vm1, %v748_v58  ;;  %v716_v6 = vadd.f32 %v6077_v61, %v7147_v40  ;;  %v710_v8 = vpop.f32.mrb[31].mxu0  ;;  %v7416_v9 = vld [vmem:[#allocation2 + $0x139] sm:$0xff] }
 0x125   : > { %v7418_v23 = vld [vmem:[#allocation2 + $0x138] sm:$0xff]  ;;  %v7420_v27 = vld [vmem:[#allocation2 + $0x140] sm:$0xff]  ;;  %835 = vst.msk [vmem:[#allocation2 + $0x169] sm:$0xff] %vm393_vm1, %v747_v60  ;;  %v711_v28 = vadd.f32 %v7147_v40, %v710_v8  ;;  %6119 = vmatprep.mubr.msk.f32.mxu0 %vm393_vm1, %v7416_v9 }
 0x126   : > { %6266 = vmatprep.mubr.msk.f32.mxu1 %vm393_vm1, %v7418_v23  ;;  %v750_v33 = vmax.f32 %v716_v6, 0.0  ;;  %6120 = vmatmul.mubr.msk.f32.gmra.mrb[58].mxu0 %vm393_vm1, %v7428_v29  ;;  %v839_v61 = vld [vmem:[#allocation2] sm:$0xff] }
 0x127   : > { %6267 = vmatmul.mubr.msk.f32.gmra.mrb[24].mxu1 %vm393_vm1, %v7420_v27  ;;  %v749_v38 = vmax.f32 %v711_v28, 0.0  ;;  %v7446_v60 = vld [vmem:[#allocation2 + $0x159] sm:$0xff] }
 0x128   : > { %838 = vst.msk [vmem:[#allocation2 + $0x189] sm:$0xff] %vm393_vm1, %v750_v33  ;;  %v7435_v48 = vld [vmem:[#allocation2 + $0x151] sm:$0xff]  ;;  %8387 = vst [vmem:[#allocation4_spill] sm:$0xff] %v7446_v60 }
 0x129   : > { %v7437_v40 = vld [vmem:[#allocation2 + $0x150] sm:$0xff]  ;;  %v7439_v58 = vld [vmem:[#allocation2 + $0x158] sm:$0xff]  ;;  %837 = vst.msk [vmem:[#allocation2 + $0x181] sm:$0xff] %vm393_vm1, %v749_v38  ;;  %6122 = vmatprep.mubr.msk.f32.mxu0 %vm393_vm1, %v7435_v48  ;;  %v840_v38 = vld [vmem:[#allocation2 + $0x8] sm:$0xff] }
 0x12a   : > { %8386 = vst [vmem:[#allocation3_spill] sm:$0xff] %v7439_v58  ;;  %6269 = vmatprep.mubr.msk.f32.mxu1 %vm393_vm1, %v7437_v40  ;;  %6123 = vmatmul.mubr.msk.f32.gmra.mrb[60].mxu0 %vm393_vm1, %v7446_v60 }
 0x12b   : > { %6270 = vmatmul.mubr.msk.f32.gmra.mrb[26].mxu1 %vm393_vm1, %v7439_v58  ;;  %v7462_v33 = vld [vmem:[#allocation2 + $0x171] sm:$0xff] }
 0x12c   : > { %v7452_v6 = vld [vmem:[#allocation2 + $0x169] sm:$0xff] }
 0x12d   : > { %v7454_v8 = vld [vmem:[#allocation2 + $0x168] sm:$0xff]  ;;  %v7456_v28 = vld [vmem:[#allocation2 + $0x170] sm:$0xff]  ;;  %6125 = vmatprep.mubr.msk.f32.mxu0 %vm393_vm1, %v7452_v6 }
 0x12e   : > { %6272 = vmatprep.mubr.msk.f32.mxu1 %vm393_vm1, %v7454_v8  ;;  %6126 = vmatmul.mubr.msk.f32.gmra.mrb[62].mxu0 %vm393_vm1, %v7462_v33 }
 0x12f   : > { %6273 = vmatmul.mubr.msk.f32.gmra.mrb[28].mxu1 %vm393_vm1, %v7456_v28  ;;  %6130 = vmatprep.mubr.msk.f32.mxu0 %vm393_vm1, %v839_v61  ;;  %v7487_v61 = vld [vmem:[%s8353_s3 + $0x18] sm:$0xf] }
 0x130   : > { %v7469_v60 = vld [vmem:[#allocation2 + $0x180] sm:$0xff]  ;;  %v7471_v58 = vld [vmem:[#allocation2 + $0x188] sm:$0xff] }
 0x131   : > { %6275 = vmatprep.mubr.msk.f32.mxu1 %vm393_vm1, %v7469_v60 }
 0x132   : > { %6131 = vmatmul.mubr.msk.f32.vlgmr.msra.gmra.mrb[32].mxu0 %vm393_vm1, %v840_v38  ;;  %v7650_v38 = vld [vmem:[#allocation2 + $0x52] sm:$0xff] }
 0x133   : > { %6276 = vmatmul.mubr.msk.f32.gmra.mrb[30].mxu1 %vm393_vm1, %v7471_v58  ;;  %6133 = vmatprep.mubr.msk.f32.mxu0 %vm393_vm1, %v7170_v0  ;;  %v1554_v0 = vld [vmem:[#allocation2 + $0x2] sm:$0xff] }
 0x134   : > { %6280 = vmatprep.mubr.msk.f32.mxu1 %vm393_vm1, %v7168_v63  ;;  %6179 = vmatpush3.msk.msra.mxu0 %vm490_vm0, %v7158_v54  ;;  %v8388_v54 = vld [vmem:[#allocation3_spill] sm:$0xff]  ;;  %v8389_v63 = vld [vmem:[#allocation4_spill] sm:$0xff] }
 0x136   : > { %6134 = vmatmul.mubr.msk.f32.gmra.mrb[34].mxu0 %vm393_vm1, %v7172_v1  ;;  %v7609_v1 = vld [vmem:[#allocation2 + $0x181] sm:$0xff] }
 0x137   : > { %6281 = vmatmul.mubr.msk.f32.vlgmr.msra.gmra.mrb[0].mxu1 %vm393_vm1, %v7180_v3  ;;  %6136 = vmatprep.mubr.msk.f32.mxu0 %vm393_vm1, %v7196_v11  ;;  %v1555_v3 = vld [vmem:[#allocation2 + $0xa] sm:$0xff] }
 0x138   : > { %6329 = vmatpush3.msk.msra.mxu1 %vm490_vm0, %v7185_v4  ;;  %6283 = vmatprep.mubr.msk.f32.mxu1 %vm393_vm1, %v7194_v10  ;;  %v7614_v4 = vld [vmem:[#allocation2 + $0x189] sm:$0xff]  ;;  %v1556_v10 = vld [vmem:[#allocation2 + $0x1a] sm:$0xff] }
 0x139   : > { %6378 = vmatprep.subr.msk.mxu1 %vm490_vm0, %v7487_v61 }
 0x13a   : > { %6137 = vmatmul.mubr.msk.f32.gmra.mrb[36].mxu0 %vm393_vm1, %v7198_v12 }
 0x13b   : > { %6284 = vmatmul.mubr.msk.f32.gmra.mrb[2].mxu1 %vm393_vm1, %v7208_v14  ;;  %6139 = vmatprep.mubr.msk.f32.mxu0 %vm393_vm1, %v7218_v21  ;;  %v1557_v14 = vld [vmem:[#allocation2 + $0x22] sm:$0xff] }
 0x13c   : > { %6286 = vmatprep.mubr.msk.f32.mxu1 %vm393_vm1, %v7216_v20  ;;  %v7624_v20 = vld [vmem:[%s8353_s3 + $0x1c] sm:$0xf] }
 0x13e   : > { %6140 = vmatmul.mubr.msk.f32.gmra.mrb[38].mxu0 %vm393_vm1, %v7220_v22 }
 0x13f   : > { %6287 = vmatmul.mubr.msk.f32.gmra.mrb[4].mxu1 %vm393_vm1, %v7228_v24  ;;  %6142 = vmatprep.mubr.msk.f32.mxu0 %vm393_vm1, %v7238_v31  ;;  %v7628_v24 = vld [vmem:[#allocation2 + $0x32] sm:$0xff] }
 0x140   : > { %6289 = vmatprep.mubr.msk.f32.mxu1 %vm393_vm1, %v7236_v30  ;;  %v7638_v30 = vld [vmem:[#allocation2 + $0x3a] sm:$0xff] }
 0x142   : > { %6143 = vmatmul.mubr.msk.f32.gmra.mrb[40].mxu0 %vm393_vm1, %v7240_v32 }
 0x143   : > { %6290 = vmatmul.mubr.msk.f32.gmra.mrb[6].mxu1 %vm393_vm1, %v7248_v34  ;;  %6145 = vmatprep.mubr.msk.f32.mxu0 %vm393_vm1, %v7258_v42  ;;  %v7644_v34 = vld [vmem:[#allocation2 + $0x4a] sm:$0xff] }
 0x144   : > { %6292 = vmatprep.mubr.msk.f32.mxu1 %vm393_vm1, %v7256_v41 }
 0x146   : > { %6146 = vmatmul.mubr.msk.f32.gmra.mrb[42].mxu0 %vm393_vm1, %v7260_v43 }
 0x147   : > { %6293 = vmatmul.mubr.msk.f32.gmra.mrb[8].mxu1 %vm393_vm1, %v7268_v45  ;;  %6148 = vmatprep.mubr.msk.f32.mxu0 %vm393_vm1, %v7278_v52 }
 0x148   : > { %6295 = vmatprep.mubr.msk.f32.mxu1 %vm393_vm1, %v7276_v51 }
 0x14a   : > { %6149 = vmatmul.mubr.msk.f32.gmra.mrb[44].mxu0 %vm393_vm1, %v7280_v53 }
 0x14b   : > { %6296 = vmatmul.mubr.msk.f32.gmra.mrb[10].mxu1 %vm393_vm1, %v7288_v56  ;;  %6151 = vmatprep.mubr.msk.f32.mxu0 %vm393_vm1, %v7298_v2 }
 0x14c   : > { %6298 = vmatprep.mubr.msk.f32.mxu1 %vm393_vm1, %v7296_v62 }
 0x14e   : > { %6152 = vmatmul.mubr.msk.f32.gmra.mrb[46].mxu0 %vm393_vm1, %v7300_v5 }
 0x14f   : > { %6299 = vmatmul.mubr.msk.f32.gmra.mrb[12].mxu1 %vm393_vm1, %v7308_v7  ;;  %6154 = vmatprep.mubr.msk.f32.mxu0 %vm393_vm1, %v7318_v18 }
 0x150   : > { %6301 = vmatprep.mubr.msk.f32.mxu1 %vm393_vm1, %v7316_v17 }
 0x152   : > { %6155 = vmatmul.mubr.msk.f32.gmra.mrb[48].mxu0 %vm393_vm1, %v7320_v19 }
 0x153   : > { %6302 = vmatmul.mubr.msk.f32.gmra.mrb[14].mxu1 %vm393_vm1, %v7328_v25  ;;  %6157 = vmatprep.mubr.msk.f32.mxu0 %vm393_vm1, %v7338_v36 }
 0x154   : > { %6304 = vmatprep.mubr.msk.f32.mxu1 %vm393_vm1, %v7336_v35 }
 0x156   : > { %6158 = vmatmul.mubr.msk.f32.gmra.mrb[50].mxu0 %vm393_vm1, %v7340_v37 }
 0x157   : > { %6305 = vmatmul.mubr.msk.f32.gmra.mrb[16].mxu1 %vm393_vm1, %v7348_v39  ;;  %6160 = vmatprep.mubr.msk.f32.mxu0 %vm393_vm1, %v7358_v55 }
 0x158   : > { %6307 = vmatprep.mubr.msk.f32.mxu1 %vm393_vm1, %v7356_v50 }
 0x15a   : > { %6161 = vmatmul.mubr.msk.f32.gmra.mrb[52].mxu0 %vm393_vm1, %v7360_v57 }
 0x15b   : > { %6308 = vmatmul.mubr.msk.f32.gmra.mrb[18].mxu1 %vm393_vm1, %v7368_v59  ;;  %6163 = vmatprep.mubr.msk.f32.mxu0 %vm393_vm1, %v7378_v15 }
 0x15c   : > { %6310 = vmatprep.mubr.msk.f32.mxu1 %vm393_vm1, %v7376_v13 }
 0x15e   : > { %6164 = vmatmul.mubr.msk.f32.gmra.mrb[54].mxu0 %vm393_vm1, %v7380_v16 }
 0x15f   : > { %6311 = vmatmul.mubr.msk.f32.gmra.mrb[20].mxu1 %vm393_vm1, %v7388_v26  ;;  %6166 = vmatprep.mubr.msk.f32.mxu0 %vm393_vm1, %v7398_v46 }
 0x160   : > { %6313 = vmatprep.mubr.msk.f32.mxu1 %vm393_vm1, %v7396_v44 }
 0x162   : > { %6167 = vmatmul.mubr.msk.f32.gmra.mrb[56].mxu0 %vm393_vm1, %v7400_v47 }
 0x163   : > { %6314 = vmatmul.mubr.msk.f32.gmra.mrb[22].mxu1 %vm393_vm1, %v7408_v49  ;;  %6169 = vmatprep.mubr.msk.f32.mxu0 %vm393_vm1, %v7418_v23 }
 0x164   : > { %6316 = vmatprep.mubr.msk.f32.mxu1 %vm393_vm1, %v7416_v9 }
 0x166   : > { %6170 = vmatmul.mubr.msk.f32.gmra.mrb[58].mxu0 %vm393_vm1, %v7420_v27 }
 0x167   : > { %6317 = vmatmul.mubr.msk.f32.gmra.mrb[24].mxu1 %vm393_vm1, %v7428_v29  ;;  %6172 = vmatprep.mubr.msk.f32.mxu0 %vm393_vm1, %v7437_v40 }
 0x168   : > { %6319 = vmatprep.mubr.msk.f32.mxu1 %vm393_vm1, %v7435_v48 }
 0x16a   : > { %6173 = vmatmul.mubr.msk.f32.gmra.mrb[60].mxu0 %vm393_vm1, %v8388_v54 }
 0x16b   : > { %6320 = vmatmul.mubr.msk.f32.gmra.mrb[26].mxu1 %vm393_vm1, %v8389_v63  ;;  %6175 = vmatprep.mubr.msk.f32.mxu0 %vm393_vm1, %v7454_v8 }
 0x16c   : > { %6322 = vmatprep.mubr.msk.f32.mxu1 %vm393_vm1, %v7452_v6 }
 0x16e   : > { %6176 = vmatmul.mubr.msk.f32.gmra.mrb[62].mxu0 %vm393_vm1, %v7456_v28 }
 0x16f   : > { %6323 = vmatmul.mubr.msk.f32.gmra.mrb[28].mxu1 %vm393_vm1, %v7462_v33  ;;  %6180 = vmatprep.mubr.msk.f32.mxu0 %vm393_vm1, %v1554_v0  ;;  %v7662_v0 = vld [vmem:[#allocation2 + $0x6a] sm:$0xff] }
 0x170   : > { %6325 = vmatprep.mubr.msk.f32.mxu1 %vm393_vm1, %v7609_v1  ;;  %8390 = vst [vmem:[#allocation3_spill] sm:$0xff] %v7662_v0 }
 0x172   : > { %6181 = vmatmul.mubr.msk.f32.vlgmr.msra.gmra.mrb[32].mxu0 %vm393_vm1, %v1555_v3  ;;  %v7668_v3 = vld [vmem:[#allocation2 + $0x7a] sm:$0xff] }
 0x173   : > { %6326 = vmatmul.mubr.msk.f32.gmra.mrb[30].mxu1 %vm393_vm1, %v7614_v4  ;;  %6183 = vmatprep.mubr.msk.f32.mxu0 %vm393_vm1, %v1556_v10  ;;  %8391 = vst [vmem:[#allocation4_spill] sm:$0xff] %v7668_v3 }
 0x174   : > { %6330 = vmatprep.mubr.msk.f32.mxu1 %vm393_vm1, %v1556_v10  ;;  %v7674_v10 = vld [vmem:[#allocation2 + $0x82] sm:$0xff] }
 0x175   : > { %8392 = vst [vmem:[#allocation5_spill] sm:$0xff] %v7674_v10 }
 0x176   : > { %6184 = vmatmul.mubr.msk.f32.gmra.mrb[34].mxu0 %vm393_vm1, %v1557_v14 }
 0x177   : > { %6331 = vmatmul.mubr.msk.f32.vlgmr.msra.gmra.mrb[0].mxu1 %vm393_vm1, %v1557_v14  ;;  %6186 = vmatprep.mubr.msk.f32.mxu0 %vm393_vm1, %v7628_v24  ;;  %v7680_v14 = vld [vmem:[#allocation2 + $0x92] sm:$0xff] }
 0x178   : > { %6379 = vmatpush3.msk.msra.mxu1 %vm490_vm0, %v7487_v61  ;;  %6333 = vmatprep.mubr.msk.f32.mxu1 %vm393_vm1, %v7628_v24  ;;  %v7656_v61 = vld [vmem:[#allocation2 + $0x62] sm:$0xff]  ;;  %8393 = vst [vmem:[#allocation6_spill] sm:$0xff] %v7680_v14 }
 0x179   : > { %6428 = vmatprep.subr.msk.mxu1 %vm490_vm0, %v7624_v20 }
 0x17a   : > { %6187 = vmatmul.mubr.msk.f32.gmra.mrb[36].mxu0 %vm393_vm1, %v7638_v30 }
 0x17b   : > { %6334 = vmatmul.mubr.msk.f32.gmra.mrb[2].mxu1 %vm393_vm1, %v7638_v30  ;;  %6189 = vmatprep.mubr.msk.f32.mxu0 %vm393_vm1, %v7644_v34 }
 0x17c   : > { %6336 = vmatprep.mubr.msk.f32.mxu1 %vm393_vm1, %v7644_v34 }
 0x17e   : > { %6190 = vmatmul.mubr.msk.f32.gmra.mrb[38].mxu0 %vm393_vm1, %v7650_v38 }
 0x17f   : > { %6337 = vmatmul.mubr.msk.f32.gmra.mrb[4].mxu1 %vm393_vm1, %v7650_v38  ;;  %6192 = vmatprep.mubr.msk.f32.mxu0 %vm393_vm1, %v7656_v61 }
 0x180   : > { %6339 = vmatprep.mubr.msk.f32.mxu1 %vm393_vm1, %v7656_v61 }
 0x182   : > { %6193 = vmatmul.mubr.msk.f32.gmra.mrb[40].mxu0 %vm393_vm1, %v7662_v0 }
 0x183   : > { %6340 = vmatmul.mubr.msk.f32.gmra.mrb[6].mxu1 %vm393_vm1, %v7662_v0  ;;  %6195 = vmatprep.mubr.msk.f32.mxu0 %vm393_vm1, %v7668_v3  ;;  %v7686_v0 = vld [vmem:[#allocation2 + $0x9a] sm:$0xff] }
 0x184   : > { %6342 = vmatprep.mubr.msk.f32.mxu1 %vm393_vm1, %v7668_v3  ;;  %8394 = vst [vmem:[#allocation7_spill] sm:$0xff] %v7686_v0  ;;  %v7692_v3 = vld [vmem:[#allocation2 + $0xaa] sm:$0xff] }
 0x185   : > { %8395 = vst [vmem:[#allocation8_spill] sm:$0xff] %v7692_v3 }
 0x186   : > { %6196 = vmatmul.mubr.msk.f32.gmra.mrb[42].mxu0 %vm393_vm1, %v7674_v10 }
 0x187   : > { %6343 = vmatmul.mubr.msk.f32.gmra.mrb[8].mxu1 %vm393_vm1, %v7674_v10  ;;  %6198 = vmatprep.mubr.msk.f32.mxu0 %vm393_vm1, %v7680_v14  ;;  %v7698_v10 = vld [vmem:[#allocation2 + $0xb2] sm:$0xff] }
 0x188   : > { %6345 = vmatprep.mubr.msk.f32.mxu1 %vm393_vm1, %v7680_v14  ;;  %8396 = vst [vmem:[#allocation9_spill] sm:$0xff] %v7698_v10  ;;  %v7704_v14 = vld [vmem:[#allocation2 + $0xc2] sm:$0xff] }
 0x189   : > { %8397 = vst [vmem:[#allocation10_spill] sm:$0xff] %v7704_v14 }
 0x18a   : > { %6199 = vmatmul.mubr.msk.f32.gmra.mrb[44].mxu0 %vm393_vm1, %v7686_v0 }
 0x18b   : > { %6346 = vmatmul.mubr.msk.f32.gmra.mrb[10].mxu1 %vm393_vm1, %v7686_v0  ;;  %6201 = vmatprep.mubr.msk.f32.mxu0 %vm393_vm1, %v7692_v3  ;;  %v7710_v0 = vld [vmem:[#allocation2 + $0xca] sm:$0xff] }
 0x18c   : > { %6348 = vmatprep.mubr.msk.f32.mxu1 %vm393_vm1, %v7692_v3  ;;  %8398 = vst [vmem:[#allocation11_spill] sm:$0xff] %v7710_v0  ;;  %v7716_v3 = vld [vmem:[#allocation2 + $0xda] sm:$0xff] }
 0x18d   : > { %8399 = vst [vmem:[#allocation12_spill] sm:$0xff] %v7716_v3 }
 0x18e   : > { %6202 = vmatmul.mubr.msk.f32.gmra.mrb[46].mxu0 %vm393_vm1, %v7698_v10 }
 0x18f   : > { %6349 = vmatmul.mubr.msk.f32.gmra.mrb[12].mxu1 %vm393_vm1, %v7698_v10  ;;  %6204 = vmatprep.mubr.msk.f32.mxu0 %vm393_vm1, %v7704_v14  ;;  %v7722_v10 = vld [vmem:[#allocation2 + $0xe2] sm:$0xff] }
 0x190   : > { %6351 = vmatprep.mubr.msk.f32.mxu1 %vm393_vm1, %v7704_v14  ;;  %8400 = vst [vmem:[#allocation13_spill] sm:$0xff] %v7722_v10  ;;  %v7728_v14 = vld [vmem:[#allocation2 + $0xf2] sm:$0xff] }
 0x191   : > { %8401 = vst [vmem:[#allocation14_spill] sm:$0xff] %v7728_v14 }
 0x192   : > { %6205 = vmatmul.mubr.msk.f32.gmra.mrb[48].mxu0 %vm393_vm1, %v7710_v0 }
 0x193   : > { %6352 = vmatmul.mubr.msk.f32.gmra.mrb[14].mxu1 %vm393_vm1, %v7710_v0  ;;  %6207 = vmatprep.mubr.msk.f32.mxu0 %vm393_vm1, %v7716_v3  ;;  %v7734_v0 = vld [vmem:[#allocation2 + $0xfa] sm:$0xff] }
 0x194   : > { %6354 = vmatprep.mubr.msk.f32.mxu1 %vm393_vm1, %v7716_v3  ;;  %8402 = vst [vmem:[#allocation15_spill] sm:$0xff] %v7734_v0  ;;  %v7740_v3 = vld [vmem:[#allocation2 + $0x10a] sm:$0xff] }
 0x195   : > { %8403 = vst [vmem:[#allocation16_spill] sm:$0xff] %v7740_v3 }
 0x196   : > { %6208 = vmatmul.mubr.msk.f32.gmra.mrb[50].mxu0 %vm393_vm1, %v7722_v10 }
 0x197   : > { %6355 = vmatmul.mubr.msk.f32.gmra.mrb[16].mxu1 %vm393_vm1, %v7722_v10  ;;  %6210 = vmatprep.mubr.msk.f32.mxu0 %vm393_vm1, %v7728_v14  ;;  %v7746_v10 = vld [vmem:[#allocation2 + $0x112] sm:$0xff] }
 0x198   : > { %6357 = vmatprep.mubr.msk.f32.mxu1 %vm393_vm1, %v7728_v14  ;;  %8404 = vst [vmem:[#allocation17_spill] sm:$0xff] %v7746_v10  ;;  %v7752_v14 = vld [vmem:[#allocation2 + $0x122] sm:$0xff] }
 0x199   : > { %8405 = vst [vmem:[#allocation18_spill] sm:$0xff] %v7752_v14 }
 0x19a   : > { %6211 = vmatmul.mubr.msk.f32.gmra.mrb[52].mxu0 %vm393_vm1, %v7734_v0 }
 0x19b   : > { %6358 = vmatmul.mubr.msk.f32.gmra.mrb[18].mxu1 %vm393_vm1, %v7734_v0  ;;  %6213 = vmatprep.mubr.msk.f32.mxu0 %vm393_vm1, %v7740_v3  ;;  %v7758_v0 = vld [vmem:[#allocation2 + $0x12a] sm:$0xff] }
 0x19c   : > { %6360 = vmatprep.mubr.msk.f32.mxu1 %vm393_vm1, %v7740_v3  ;;  %8406 = vst [vmem:[#allocation19_spill] sm:$0xff] %v7758_v0  ;;  %v7764_v3 = vld [vmem:[#allocation2 + $0x13a] sm:$0xff] }
 0x19d   : > { %8407 = vst [vmem:[#allocation20_spill] sm:$0xff] %v7764_v3 }
 0x19e   : > { %6214 = vmatmul.mubr.msk.f32.gmra.mrb[54].mxu0 %vm393_vm1, %v7746_v10 }
 0x19f   : > { %6361 = vmatmul.mubr.msk.f32.gmra.mrb[20].mxu1 %vm393_vm1, %v7746_v10  ;;  %6216 = vmatprep.mubr.msk.f32.mxu0 %vm393_vm1, %v7752_v14  ;;  %v7770_v10 = vld [vmem:[#allocation2 + $0x142] sm:$0xff] }
 0x1a0   : > { %6363 = vmatprep.mubr.msk.f32.mxu1 %vm393_vm1, %v7752_v14  ;;  %8408 = vst [vmem:[#allocation21_spill] sm:$0xff] %v7770_v10  ;;  %v7776_v14 = vld [vmem:[#allocation2 + $0x152] sm:$0xff] }
 0x1a1   : > { %8409 = vst [vmem:[#allocation22_spill] sm:$0xff] %v7776_v14 }
 0x1a2   : > { %6217 = vmatmul.mubr.msk.f32.gmra.mrb[56].mxu0 %vm393_vm1, %v7758_v0 }
 0x1a3   : > { %6364 = vmatmul.mubr.msk.f32.gmra.mrb[22].mxu1 %vm393_vm1, %v7758_v0  ;;  %6219 = vmatprep.mubr.msk.f32.mxu0 %vm393_vm1, %v7764_v3  ;;  %v7782_v0 = vld [vmem:[#allocation2 + $0x15a] sm:$0xff] }
 0x1a4   : > { %6366 = vmatprep.mubr.msk.f32.mxu1 %vm393_vm1, %v7764_v3  ;;  %8410 = vst [vmem:[#allocation23_spill] sm:$0xff] %v7782_v0  ;;  %v7788_v3 = vld [vmem:[#allocation2 + $0x16a] sm:$0xff] }
 0x1a5   : > { %8411 = vst [vmem:[#allocation24_spill] sm:$0xff] %v7788_v3 }
 0x1a6   : > { %6220 = vmatmul.mubr.msk.f32.gmra.mrb[58].mxu0 %vm393_vm1, %v7770_v10 }
 0x1a7   : > { %6367 = vmatmul.mubr.msk.f32.gmra.mrb[24].mxu1 %vm393_vm1, %v7770_v10  ;;  %6222 = vmatprep.mubr.msk.f32.mxu0 %vm393_vm1, %v7776_v14  ;;  %v7794_v10 = vld [vmem:[#allocation2 + $0x172] sm:$0xff] }
 0x1a8   : > { %6369 = vmatprep.mubr.msk.f32.mxu1 %vm393_vm1, %v7776_v14  ;;  %v7800_v14 = vld [vmem:[#allocation2 + $0x182] sm:$0xff] }
 0x1aa   : > { %6223 = vmatmul.mubr.msk.f32.gmra.mrb[60].mxu0 %vm393_vm1, %v7782_v0 }
 0x1ab   : > { %6370 = vmatmul.mubr.msk.f32.gmra.mrb[26].mxu1 %vm393_vm1, %v7782_v0  ;;  %6225 = vmatprep.mubr.msk.f32.mxu0 %vm393_vm1, %v7788_v3  ;;  %v7804_v0 = vld [vmem:[#allocation2 + $0x18a] sm:$0xff] }
 0x1ac   : > { %6372 = vmatprep.mubr.msk.f32.mxu1 %vm393_vm1, %v7788_v3  ;;  %v5525_v3 = vld [vmem:[%s8353_s3 + $0x20] sm:$0xf] }
 0x1ae   : > { %6226 = vmatmul.mubr.msk.f32.gmra.mrb[62].mxu0 %vm393_vm1, %v7794_v10 }
 0x1af   : > { %6373 = vmatmul.mubr.msk.f32.gmra.mrb[28].mxu1 %vm393_vm1, %v7794_v10 }
 0x1b0   : > { %6375 = vmatprep.mubr.msk.f32.mxu1 %vm393_vm1, %v7800_v14 }
 0x1b3   : > { %6376 = vmatmul.mubr.msk.f32.gmra.mrb[30].mxu1 %vm393_vm1, %v7804_v0 }
 0x1b4   : > { %6380 = vmatprep.mubr.msk.f32.mxu1 %vm393_vm1, %v7196_v11  ;;  %v3145_v11 = vld [vmem:[#allocation2 + $0x198] sm:$0xff] }
 0x1b7   : > { %6381 = vmatmul.mubr.msk.f32.vlgmr.msra.gmra.mrb[0].mxu1 %vm393_vm1, %v7198_v12  ;;  %v3146_v12 = vld [vmem:[#allocation2 + $0x1a0] sm:$0xff] }
 0x1b8   : > { %6429 = vmatpush3.msk.msra.mxu1 %vm490_vm0, %v7624_v20  ;;  %6383 = vmatprep.mubr.msk.f32.mxu1 %vm393_vm1, %v7218_v21  ;;  %v3505_v21 = vld [vmem:[#allocation2 + $0x31] sm:$0xff] }
 0x1b9   : > { %6478 = vmatprep.subr.msk.mxu1 %vm490_vm0, %v5525_v3  ;;  %v8420_v20 = vld [vmem:[#allocation11_spill] sm:$0xff] }
 0x1bb   : > { %6384 = vmatmul.mubr.msk.f32.gmra.mrb[2].mxu1 %vm393_vm1, %v7220_v22  ;;  %v3506_v22 = vld [vmem:[#allocation2 + $0x39] sm:$0xff] }
 0x1bc   : > { %6386 = vmatprep.mubr.msk.f32.mxu1 %vm393_vm1, %v7238_v31  ;;  %v3507_v31 = vld [vmem:[#allocation2 + $0x49] sm:$0xff] }
 0x1bf   : > { %6387 = vmatmul.mubr.msk.f32.gmra.mrb[4].mxu1 %vm393_vm1, %v7240_v32  ;;  %v3508_v32 = vld [vmem:[#allocation2 + $0x51] sm:$0xff] }
 0x1c0   : > { %6389 = vmatprep.mubr.msk.f32.mxu1 %vm393_vm1, %v7258_v42  ;;  %v3509_v42 = vld [vmem:[#allocation2 + $0x61] sm:$0xff] }
 0x1c3   : > { %6390 = vmatmul.mubr.msk.f32.gmra.mrb[6].mxu1 %vm393_vm1, %v7260_v43  ;;  %v3510_v43 = vld [vmem:[#allocation2 + $0x69] sm:$0xff] }
 0x1c4   : > { %6392 = vmatprep.mubr.msk.f32.mxu1 %vm393_vm1, %v7278_v52  ;;  %v4389_v52 = vld [vmem:[%s8355_s5] sm:$0xf] }
 0x1c5   : > { %6528 = vmatprep.subr.msk.mxu0 %vm490_vm0, %v4389_v52 }
 0x1c6   : > { %6529 = vmatpush3.msk.msra.mxu0 %vm490_vm0, %v4389_v52 }
 0x1c7   : > { %6393 = vmatmul.mubr.msk.f32.gmra.mrb[8].mxu1 %vm393_vm1, %v7280_v53  ;;  %v4358_v53 = vld [vmem:[%s7894_s22 + $0x8] sm:$0xff] }
 0x1c8   : > { %6395 = vmatprep.mubr.msk.f32.mxu1 %vm393_vm1, %v7298_v2  ;;  %v4359_v2 = vld [vmem:[%s7894_s22 + $0x10] sm:$0xff] }
 0x1cb   : > { %6396 = vmatmul.mubr.msk.f32.gmra.mrb[10].mxu1 %vm393_vm1, %v7300_v5  ;;  %v4361_v5 = vld [vmem:[%s7894_s22 + $0x20] sm:$0xff] }
 0x1cc   : > { %6398 = vmatprep.mubr.msk.f32.mxu1 %vm393_vm1, %v7318_v18  ;;  %v4363_v18 = vld [vmem:[%s7894_s22 + $0x30] sm:$0xff] }
 0x1cf   : > { %6399 = vmatmul.mubr.msk.f32.gmra.mrb[12].mxu1 %vm393_vm1, %v7320_v19  ;;  %v4367_v19 = vld [vmem:[%s7894_s22 + $0x50] sm:$0xff] }
 0x1d0   : > { %6401 = vmatprep.mubr.msk.f32.mxu1 %vm393_vm1, %v7338_v36  ;;  %v4370_v36 = vld [vmem:[%s7894_s22 + $0x68] sm:$0xff] }
 0x1d3   : > { %6402 = vmatmul.mubr.msk.f32.gmra.mrb[14].mxu1 %vm393_vm1, %v7340_v37  ;;  %v4371_v37 = vld [vmem:[%s7894_s22 + $0x70] sm:$0xff] }
 0x1d4   : > { %6404 = vmatprep.mubr.msk.f32.mxu1 %vm393_vm1, %v7358_v55  ;;  %v4374_v55 = vld [vmem:[%s7894_s22 + $0x88] sm:$0xff] }
 0x1d7   : > { %6405 = vmatmul.mubr.msk.f32.gmra.mrb[16].mxu1 %vm393_vm1, %v7360_v57  ;;  %v4375_v57 = vld [vmem:[%s7894_s22 + $0x90] sm:$0xff] }
 0x1d8   : > { %6407 = vmatprep.mubr.msk.f32.mxu1 %vm393_vm1, %v7378_v15  ;;  %v4378_v15 = vld [vmem:[%s7894_s22 + $0xa8] sm:$0xff] }
 0x1db   : > { %6408 = vmatmul.mubr.msk.f32.gmra.mrb[18].mxu1 %vm393_vm1, %v7380_v16  ;;  %v4379_v16 = vld [vmem:[%s7894_s22 + $0xb0] sm:$0xff] }
 0x1dc   : > { %6410 = vmatprep.mubr.msk.f32.mxu1 %vm393_vm1, %v7398_v46  ;;  %v3536_v46 = vld [vmem:[#allocation2 + $0x1a1] sm:$0xff] }
 0x1df   : > { %6411 = vmatmul.mubr.msk.f32.gmra.mrb[20].mxu1 %vm393_vm1, %v7400_v47  ;;  %v4381_v47 = vld [vmem:[%s7894_s22 + $0xc0] sm:$0xff] }
 0x1e0   : > { %6413 = vmatprep.mubr.msk.f32.mxu1 %vm393_vm1, %v7418_v23  ;;  %v4384_v23 = vld [vmem:[%s7894_s22 + $0xd8] sm:$0xff] }
 0x1e3   : > { %6414 = vmatmul.mubr.msk.f32.gmra.mrb[22].mxu1 %vm393_vm1, %v7420_v27  ;;  %v8412_v27 = vld [vmem:[#allocation3_spill] sm:$0xff] }
 0x1e4   : > { %6416 = vmatprep.mubr.msk.f32.mxu1 %vm393_vm1, %v7437_v40  ;;  %v8415_v40 = vld [vmem:[#allocation6_spill] sm:$0xff] }
 0x1e7   : > { %6417 = vmatmul.mubr.msk.f32.gmra.mrb[24].mxu1 %vm393_vm1, %v8388_v54  ;;  %v8418_v54 = vld [vmem:[#allocation9_spill] sm:$0xff] }
 0x1e8   : > { %6419 = vmatprep.mubr.msk.f32.mxu1 %vm393_vm1, %v7454_v8  ;;  %v8417_v8 = vld [vmem:[#allocation8_spill] sm:$0xff] }
 0x1eb   : > { %6420 = vmatmul.mubr.msk.f32.gmra.mrb[26].mxu1 %vm393_vm1, %v7456_v28 }
 0x1ec   : > { %6422 = vmatprep.mubr.msk.f32.mxu1 %vm393_vm1, %v7469_v60  ;;  %v8416_v60 = vld [vmem:[#allocation7_spill] sm:$0xff] }
 0x1ef   : > { %6423 = vmatmul.mubr.msk.f32.gmra.mrb[28].mxu1 %vm393_vm1, %v7471_v58 }
 0x1f0   : > { %6425 = vmatprep.mubr.msk.f32.mxu1 %vm393_vm1, %v3145_v11 }
 0x1f3   : > { %6426 = vmatmul.mubr.msk.f32.gmra.mrb[30].mxu1 %vm393_vm1, %v3146_v12  ;;  %v8424_v12 = vld [vmem:[#allocation15_spill] sm:$0xff] }
 0x1f4   : > { %6430 = vmatprep.mubr.msk.f32.mxu1 %vm393_vm1, %v3505_v21  ;;  %v8425_v21 = vld [vmem:[#allocation16_spill] sm:$0xff] }
 0x1f7   : > { %6431 = vmatmul.mubr.msk.f32.vlgmr.msra.gmra.mrb[0].mxu1 %vm393_vm1, %v3506_v22 }
 0x1f8   : > { %6479 = vmatpush3.msk.msra.mxu1 %vm490_vm0, %v5525_v3  ;;  %6433 = vmatprep.mubr.msk.f32.mxu1 %vm393_vm1, %v3507_v31 }
 0x1fb   : > { %6434 = vmatmul.mubr.msk.f32.gmra.mrb[2].mxu1 %vm393_vm1, %v3508_v32  ;;  %v8426_v32 = vld [vmem:[#allocation17_spill] sm:$0xff] }
 0x1fc   : > { %6436 = vmatprep.mubr.msk.f32.mxu1 %vm393_vm1, %v3509_v42  ;;  %v8427_v42 = vld [vmem:[#allocation18_spill] sm:$0xff] }
 0x1ff   : > { %6437 = vmatmul.mubr.msk.f32.gmra.mrb[4].mxu1 %vm393_vm1, %v3510_v43 }
 0x200   : > { %6439 = vmatprep.mubr.msk.f32.mxu1 %vm393_vm1, %v7256_v41  ;;  %v4356_v41 = vld [vmem:[%s8354_s4] sm:$0xf] }
 0x201   : > { %6578 = vmatprep.subr.msk.mxu0 %vm490_vm0, %v4356_v41 }
 0x203   : > { %6440 = vmatmul.mubr.msk.f32.gmra.mrb[6].mxu1 %vm393_vm1, %v7268_v45  ;;  %v4357_v45 = vld [vmem:[%s7894_s22] sm:$0xff] }
 0x204   : > { %6442 = vmatprep.mubr.msk.f32.mxu1 %vm393_vm1, %v7276_v51  ;;  %6530 = vmatprep.mubr.msk.f32.mxu0 %vm393_vm1, %v4357_v45  ;;  %v4360_v51 = vld [vmem:[%s7894_s22 + $0x18] sm:$0xff] }
 0x205   : > { %6531 = vmatmul.mubr.msk.f32.vlgmr.msra.gmra.mrb[64].mxu0 %vm393_vm1, %v4358_v53  ;;  %v8429_v45 = vld [vmem:[#allocation20_spill] sm:$0xff] }
 0x206   : > { %6579 = vmatpush3.msk.msra.mxu0 %vm490_vm0, %v4356_v41  ;;  %6533 = vmatprep.mubr.msk.f32.mxu0 %vm393_vm1, %v4359_v2  ;;  %v8428_v41 = vld [vmem:[#allocation19_spill] sm:$0xff] }
 0x207   : > { %6443 = vmatmul.mubr.msk.f32.gmra.mrb[8].mxu1 %vm393_vm1, %v7288_v56  ;;  %v4362_v56 = vld [vmem:[%s7894_s22 + $0x28] sm:$0xff] }
 0x208   : > { %6445 = vmatprep.mubr.msk.f32.mxu1 %vm393_vm1, %v7296_v62  ;;  %v4364_v62 = vld [vmem:[%s7894_s22 + $0x38] sm:$0xff] }
 0x209   : > { %6534 = vmatmul.mubr.msk.f32.gmra.mrb[66].mxu0 %vm393_vm1, %v4360_v51  ;;  %v8430_v51 = vld [vmem:[#allocation21_spill] sm:$0xff] }
 0x20a   : > { %6536 = vmatprep.mubr.msk.f32.mxu0 %vm393_vm1, %v4361_v5  ;;  %v8431_v5 = vld [vmem:[#allocation22_spill] sm:$0xff] }
 0x20b   : > { %6446 = vmatmul.mubr.msk.f32.gmra.mrb[10].mxu1 %vm393_vm1, %v7308_v7  ;;  %v4365_v7 = vld [vmem:[%s7894_s22 + $0x40] sm:$0xff] }
 0x20c   : > { %6448 = vmatprep.mubr.msk.f32.mxu1 %vm393_vm1, %v7316_v17  ;;  %v4366_v17 = vld [vmem:[%s7894_s22 + $0x48] sm:$0xff] }
 0x20d   : > { %6537 = vmatmul.mubr.msk.f32.gmra.mrb[68].mxu0 %vm393_vm1, %v4362_v56 }
 0x20e   : > { %6539 = vmatprep.mubr.msk.f32.mxu0 %vm393_vm1, %v4363_v18 }
 0x20f   : > { %6449 = vmatmul.mubr.msk.f32.gmra.mrb[12].mxu1 %vm393_vm1, %v7328_v25  ;;  %v4368_v25 = vld [vmem:[%s7894_s22 + $0x58] sm:$0xff] }
 0x210   : > { %6451 = vmatprep.mubr.msk.f32.mxu1 %vm393_vm1, %v7336_v35  ;;  %v4369_v35 = vld [vmem:[%s7894_s22 + $0x60] sm:$0xff] }
 0x211   : > { %6540 = vmatmul.mubr.msk.f32.gmra.mrb[70].mxu0 %vm393_vm1, %v4364_v62  ;;  %v8432_v62 = vld [vmem:[#allocation23_spill] sm:$0xff] }
 0x212   : > { %6542 = vmatprep.mubr.msk.f32.mxu0 %vm393_vm1, %v4365_v7  ;;  %v8433_v7 = vld [vmem:[#allocation24_spill] sm:$0xff] }
 0x213   : > { %6452 = vmatmul.mubr.msk.f32.gmra.mrb[14].mxu1 %vm393_vm1, %v7348_v39  ;;  %v4372_v39 = vld [vmem:[%s7894_s22 + $0x78] sm:$0xff] }
 0x214   : > { %6454 = vmatprep.mubr.msk.f32.mxu1 %vm393_vm1, %v7356_v50  ;;  %v4373_v50 = vld [vmem:[%s7894_s22 + $0x80] sm:$0xff] }
 0x215   : > { %6543 = vmatmul.mubr.msk.f32.gmra.mrb[72].mxu0 %vm393_vm1, %v4366_v17 }
 0x216   : > { %6545 = vmatprep.mubr.msk.f32.mxu0 %vm393_vm1, %v4367_v19 }
 0x217   : > { %6455 = vmatmul.mubr.msk.f32.gmra.mrb[16].mxu1 %vm393_vm1, %v7368_v59  ;;  %v4376_v59 = vld [vmem:[%s7894_s22 + $0x98] sm:$0xff] }
 0x218   : > { %6457 = vmatprep.mubr.msk.f32.mxu1 %vm393_vm1, %v7376_v13  ;;  %v4377_v13 = vld [vmem:[%s7894_s22 + $0xa0] sm:$0xff] }
 0x219   : > { %6546 = vmatmul.mubr.msk.f32.gmra.mrb[74].mxu0 %vm393_vm1, %v4368_v25  ;;  %v3925_v25 = vld [vmem:[#allocation2 + $0x19a] sm:$0xff] }
 0x21a   : > { %6548 = vmatprep.mubr.msk.f32.mxu0 %vm393_vm1, %v4369_v35 }
 0x21b   : > { %6458 = vmatmul.mubr.msk.f32.gmra.mrb[18].mxu1 %vm393_vm1, %v7388_v26  ;;  %v3535_v26 = vld [vmem:[#allocation2 + $0x199] sm:$0xff] }
 0x21c   : > { %6460 = vmatprep.mubr.msk.f32.mxu1 %vm393_vm1, %v7396_v44  ;;  %v4380_v44 = vld [vmem:[%s7894_s22 + $0xb8] sm:$0xff] }
 0x21d   : > { %6549 = vmatmul.mubr.msk.f32.gmra.mrb[76].mxu0 %vm393_vm1, %v4370_v36 }
 0x21e   : > { %6551 = vmatprep.mubr.msk.f32.mxu0 %vm393_vm1, %v4371_v37  ;;  %v3926_v37 = vld [vmem:[#allocation2 + $0x1a2] sm:$0xff] }
 0x21f   : > { %6461 = vmatmul.mubr.msk.f32.gmra.mrb[20].mxu1 %vm393_vm1, %v7408_v49  ;;  %v4382_v49 = vld [vmem:[%s7894_s22 + $0xc8] sm:$0xff] }
 0x220   : > { %6463 = vmatprep.mubr.msk.f32.mxu1 %vm393_vm1, %v7416_v9  ;;  %v4383_v9 = vld [vmem:[%s7894_s22 + $0xd0] sm:$0xff] }
 0x221   : > { %6552 = vmatmul.mubr.msk.f32.gmra.mrb[78].mxu0 %vm393_vm1, %v4372_v39 }
 0x222   : > { %6554 = vmatprep.mubr.msk.f32.mxu0 %vm393_vm1, %v4373_v50 }
 0x223   : > { %6464 = vmatmul.mubr.msk.f32.gmra.mrb[22].mxu1 %vm393_vm1, %v7428_v29  ;;  %v8413_v29 = vld [vmem:[#allocation4_spill] sm:$0xff] }
 0x224   : > { %6466 = vmatprep.mubr.msk.f32.mxu1 %vm393_vm1, %v7435_v48  ;;  %v8414_v48 = vld [vmem:[#allocation5_spill] sm:$0xff] }
 0x225   : > { %6555 = vmatmul.mubr.msk.f32.gmra.mrb[80].mxu0 %vm393_vm1, %v4374_v55 }
 0x226   : > { %6557 = vmatprep.mubr.msk.f32.mxu0 %vm393_vm1, %v4375_v57 }
 0x227   : > { %6467 = vmatmul.mubr.msk.f32.gmra.mrb[24].mxu1 %vm393_vm1, %v8389_v63  ;;  %v8419_v63 = vld [vmem:[#allocation10_spill] sm:$0xff] }
 0x228   : > { %6469 = vmatprep.mubr.msk.f32.mxu1 %vm393_vm1, %v7452_v6 }
 0x229   : > { %6558 = vmatmul.mubr.msk.f32.gmra.mrb[82].mxu0 %vm393_vm1, %v4376_v59 }
 0x22a   : > { %6560 = vmatprep.mubr.msk.f32.mxu0 %vm393_vm1, %v4377_v13 }
 0x22b   : > { %6470 = vmatmul.mubr.msk.f32.gmra.mrb[26].mxu1 %vm393_vm1, %v7462_v33 }
 0x22c   : > { %6472 = vmatprep.mubr.msk.f32.mxu1 %vm393_vm1, %v7609_v1 }
 0x22d   : > { %6561 = vmatmul.mubr.msk.f32.gmra.mrb[84].mxu0 %vm393_vm1, %v4378_v15 }
 0x22e   : > { %6563 = vmatprep.mubr.msk.f32.mxu0 %vm393_vm1, %v4379_v16  ;;  %v4385_v16 = vld [vmem:[%s7894_s22 + $0xe0] sm:$0xff] }
 0x22f   : > { %6473 = vmatmul.mubr.msk.f32.gmra.mrb[28].mxu1 %vm393_vm1, %v7614_v4 }
 0x230   : > { %6475 = vmatprep.mubr.msk.f32.mxu1 %vm393_vm1, %v3535_v26  ;;  %v4386_v26 = vld [vmem:[%s7894_s22 + $0xe8] sm:$0xff] }
 0x231   : > { %6564 = vmatmul.mubr.msk.f32.gmra.mrb[86].mxu0 %vm393_vm1, %v4380_v44  ;;  %v4387_v44 = vld [vmem:[%s7894_s22 + $0xf0] sm:$0xff] }
 0x232   : > { %6566 = vmatprep.mubr.msk.f32.mxu0 %vm393_vm1, %v4381_v47 }
 0x233   : > { %6476 = vmatmul.mubr.msk.f32.gmra.mrb[30].mxu1 %vm393_vm1, %v3536_v46  ;;  %v4388_v46 = vld [vmem:[%s7894_s22 + $0xf8] sm:$0xff] }
 0x234   : > { %6480 = vmatprep.mubr.msk.f32.mxu1 %vm393_vm1, %v7628_v24  ;;  %v8421_v24 = vld [vmem:[#allocation12_spill] sm:$0xff] }
 0x235   : > { %6567 = vmatmul.mubr.msk.f32.gmra.mrb[88].mxu0 %vm393_vm1, %v4382_v49  ;;  %v8142_v49 = vld [vmem:[%s8357_s7] ss:$0 sm:$0xff] }
 0x236   : > { %6569 = vmatprep.mubr.msk.f32.mxu0 %vm393_vm1, %v4383_v9 }
 0x237   : > { %6481 = vmatmul.mubr.msk.f32.vlgmr.msra.gmra.mrb[0].mxu1 %vm393_vm1, %v7638_v30 }
 0x238   : > { %6483 = vmatprep.mubr.msk.f32.mxu1 %vm393_vm1, %v7644_v34 }
 0x239   : > { %6570 = vmatmul.mubr.msk.f32.gmra.mrb[90].mxu0 %vm393_vm1, %v4384_v23 }
 0x23a   : > { %6572 = vmatprep.mubr.msk.f32.mxu0 %vm393_vm1, %v4385_v16 }
 0x23b   : > { %6484 = vmatmul.mubr.msk.f32.gmra.mrb[2].mxu1 %vm393_vm1, %v7650_v38  ;;  %v8422_v38 = vld [vmem:[#allocation13_spill] sm:$0xff] }
 0x23c   : > { %6486 = vmatprep.mubr.msk.f32.mxu1 %vm393_vm1, %v7656_v61  ;;  %v8423_v61 = vld [vmem:[#allocation14_spill] sm:$0xff] }
 0x23d   : > { %6573 = vmatmul.mubr.msk.f32.gmra.mrb[92].mxu0 %vm393_vm1, %v4386_v26 }
 0x23e   : > { %6575 = vmatprep.mubr.msk.f32.mxu0 %vm393_vm1, %v4387_v44 }
 0x23f   : > { %6487 = vmatmul.mubr.msk.f32.gmra.mrb[4].mxu1 %vm393_vm1, %v8412_v27 }
 0x240   : > { %6489 = vmatprep.mubr.msk.f32.mxu1 %vm393_vm1, %v8413_v29 }
 0x241   : > { %6576 = vmatmul.mubr.msk.f32.gmra.mrb[94].mxu0 %vm393_vm1, %v4388_v46 }
 0x243   : > { %6490 = vmatmul.mubr.msk.f32.gmra.mrb[6].mxu1 %vm393_vm1, %v8414_v48 }
 0x244   : > { %6492 = vmatprep.mubr.msk.f32.mxu1 %vm393_vm1, %v8415_v40 }
 0x245   : > { %v8023_v58 = vpop.f32.mrb[32].mxu0 }
 0x246   : > { %v8027_v6 = vpop.f32.mrb[33].mxu0 }
 0x247   : > { %6493 = vmatmul.mubr.msk.f32.gmra.mrb[8].mxu1 %vm393_vm1, %v8416_v60 }
 0x248   : > { %6495 = vmatprep.mubr.msk.f32.mxu1 %vm393_vm1, %v8417_v8 }
 0x249   : > { %v8031_v28 = vpop.f32.mrb[34].mxu0 }
 0x24a   : > { %v8033_v33 = vpop.f32.mrb[35].mxu0 }
 0x24b   : > { %6496 = vmatmul.mubr.msk.f32.gmra.mrb[10].mxu1 %vm393_vm1, %v8418_v54 }
 0x24c   : > { %6498 = vmatprep.mubr.msk.f32.mxu1 %vm393_vm1, %v8419_v63 }
 0x24d   : > { %v8039_v1 = vpop.f32.mrb[36].mxu0 }
 0x24e   : > { %v8041_v4 = vpop.f32.mrb[37].mxu0 }
 0x24f   : > { %6499 = vmatmul.mubr.msk.f32.gmra.mrb[12].mxu1 %vm393_vm1, %v8420_v20 }
 0x250   : > { %6501 = vmatprep.mubr.msk.f32.mxu1 %vm393_vm1, %v8421_v24 }
 0x251   : > { %v8047_v30 = vpop.f32.mrb[38].mxu0 }
 0x252   : > { %v8049_v34 = vpop.f32.mrb[39].mxu0 }
 0x253   : > { %6502 = vmatmul.mubr.msk.f32.gmra.mrb[14].mxu1 %vm393_vm1, %v8422_v38 }
 0x254   : > { %6504 = vmatprep.mubr.msk.f32.mxu1 %vm393_vm1, %v8423_v61 }
 0x255   : > { %v8055_v3 = vpop.f32.mrb[40].mxu0 }
 0x256   : > { %v8057_v11 = vpop.f32.mrb[41].mxu0 }
 0x257   : > { %6505 = vmatmul.mubr.msk.f32.gmra.mrb[16].mxu1 %vm393_vm1, %v8424_v12 }
 0x258   : > { %6507 = vmatprep.mubr.msk.f32.mxu1 %vm393_vm1, %v8425_v21 }
 0x259   : > { %v8063_v22 = vpop.f32.mrb[42].mxu0 }
 0x25a   : > { %v8065_v31 = vpop.f32.mrb[43].mxu0 }
 0x25b   : > { %6508 = vmatmul.mubr.msk.f32.gmra.mrb[18].mxu1 %vm393_vm1, %v8426_v32 }
 0x25c   : > { %6510 = vmatprep.mubr.msk.f32.mxu1 %vm393_vm1, %v8427_v42 }
 0x25d   : > { %v8071_v43 = vpop.f32.mrb[44].mxu0 }
 0x25e   : > { %v8073_v52 = vpop.f32.mrb[45].mxu0 }
 0x25f   : > { %6511 = vmatmul.mubr.msk.f32.gmra.mrb[20].mxu1 %vm393_vm1, %v8428_v41 }
 0x260   : > { %6513 = vmatprep.mubr.msk.f32.mxu1 %vm393_vm1, %v8429_v45 }
 0x261   : > { %v8079_v53 = vpop.f32.mrb[46].mxu0 }
 0x262   : > { %v8081_v2 = vpop.f32.mrb[47].mxu0 }
 0x263   : > { %6514 = vmatmul.mubr.msk.f32.gmra.mrb[22].mxu1 %vm393_vm1, %v8430_v51 }
 0x264   : > { %6516 = vmatprep.mubr.msk.f32.mxu1 %vm393_vm1, %v8431_v5 }
 0x265   : > { %v8087_v56 = vpop.f32.mrb[48].mxu0 }
 0x266   : > { %v8089_v18 = vpop.f32.mrb[49].mxu0 }
 0x267   : > { %6517 = vmatmul.mubr.msk.f32.gmra.mrb[24].mxu1 %vm393_vm1, %v8432_v62 }
 0x268   : > { %6519 = vmatprep.mubr.msk.f32.mxu1 %vm393_vm1, %v8433_v7 }
 0x269   : > { %v8095_v17 = vpop.f32.mrb[50].mxu0 }
 0x26a   : > { %v8097_v19 = vpop.f32.mrb[51].mxu0 }
 0x26b   : > { %6520 = vmatmul.mubr.msk.f32.gmra.mrb[26].mxu1 %vm393_vm1, %v7794_v10 }
 0x26c   : > { %6522 = vmatprep.mubr.msk.f32.mxu1 %vm393_vm1, %v7800_v14 }
 0x26d   : > { %v8103_v35 = vpop.f32.mrb[52].mxu0 }
 0x26e   : > { %v8105_v36 = vpop.f32.mrb[53].mxu0 }
 0x26f   : > { %6523 = vmatmul.mubr.msk.f32.gmra.mrb[28].mxu1 %vm393_vm1, %v7804_v0 }
 0x270   : > { %6525 = vmatprep.mubr.msk.f32.mxu1 %vm393_vm1, %v3925_v25 }
 0x271   : > { %v8110_v39 = vpop.f32.mrb[54].mxu0 }
 0x272   : > { %v8112_v10 = vpop.f32.mrb[55].mxu0 }
 0x273   : > { %6526 = vmatmul.mubr.msk.f32.gmra.mrb[30].mxu1 %vm393_vm1, %v3926_v37 }
 0x275   : > { %v8115_v14 = vpop.f32.mrb[56].mxu0 }
 0x276   : > { %v8117_v50 = vpop.f32.mrb[57].mxu0 }
 0x279   : > { %v8119_v55 = vpop.f32.mrb[58].mxu0 }
 0x27a   : > { %v8121_v57 = vpop.f32.mrb[59].mxu0 }
 0x27d   : > { %v8123_v0 = vpop.f32.mrb[60].mxu0 }
 0x27e   : > { %v8125_v59 = vpop.f32.mrb[61].mxu0 }
 0x281   : > { %v8127_v13 = vpop.f32.mrb[62].mxu0 }
 0x282   : > { %v8129_v15 = vpop.f32.mrb[63].mxu0 }
 0x30a   : > { %v6482_v47 = vpop.f32.mrb[0].mxu1 }
 0x30b   : > { %v6628_v9 = vadd.f32 %v6482_v47, %v8023_v58  ;;  %v4094_v23 = vpop.f32.mrb[1].mxu1 }
 0x30c   : > { %v6629_v27 = vadd.f32 %v4094_v23, %v8027_v6 }
 0x30d   : > { %v4293_v29 = vadd.f32 %v6628_v9, %v8142_v49 }
 0x30e   : > { %v4292_v48 = vadd.f32 %v6629_v27, %v8142_v49  ;;  %v6485_v40 = vpop.f32.mrb[2].mxu1 }
 0x30f   : > { %v6630_v60 = vadd.f32 %v6485_v40, %v8031_v28  ;;  %v4104_v8 = vpop.f32.mrb[3].mxu1  ;;  %v4325_v20 = vmax.f32 %v4293_v29, 0.0 }
 0x310   : > { %v4324_v54 = vmax.f32 %v4292_v48, 0.0  ;;  %v6631_v63 = vadd.f32 %v4104_v8, %v8033_v33 }
 0x311   : > { %v4295_v24 = vadd.f32 %v6630_v60, %v8142_v49 }
 0x312   : > { %v4294_v38 = vadd.f32 %v6631_v63, %v8142_v49  ;;  %v6488_v58 = vpop.f32.mrb[4].mxu1  ;;  %6580 = vmatprep.mubr.msk.f32.mxu0 %vm393_vm1, %v4324_v54 }
 0x313   : > { %v6632_v6 = vadd.f32 %v6488_v58, %v8039_v1  ;;  %v4114_v61 = vpop.f32.mrb[5].mxu1  ;;  %6581 = vmatmul.mubr.msk.f32.vlgmr.msra.gmra.mrb[64].mxu0 %vm393_vm1, %v4325_v20  ;;  %v4327_v21 = vmax.f32 %v4295_v24, 0.0 }
 0x314   : > { %v4326_v12 = vmax.f32 %v4294_v38, 0.0  ;;  %v6633_v28 = vadd.f32 %v4114_v61, %v8041_v4 }
 0x315   : > { %v4297_v32 = vadd.f32 %v6632_v6, %v8142_v49 }
 0x316   : > { %v4296_v33 = vadd.f32 %v6633_v28, %v8142_v49  ;;  %v6491_v42 = vpop.f32.mrb[6].mxu1  ;;  %6583 = vmatprep.mubr.msk.f32.mxu0 %vm393_vm1, %v4326_v12 }
 0x317   : > { %v6634_v41 = vadd.f32 %v6491_v42, %v8047_v30  ;;  %v4124_v45 = vpop.f32.mrb[7].mxu1  ;;  %6584 = vmatmul.mubr.msk.f32.gmra.mrb[66].mxu0 %vm393_vm1, %v4327_v21  ;;  %v4329_v5 = vmax.f32 %v4297_v32, 0.0 }
 0x318   : > { %v4328_v1 = vmax.f32 %v4296_v33, 0.0  ;;  %v6635_v51 = vadd.f32 %v4124_v45, %v8049_v34 }
 0x319   : > { %v4299_v62 = vadd.f32 %v6634_v41, %v8142_v49 }
 0x31a   : > { %v4298_v4 = vadd.f32 %v6635_v51, %v8142_v49  ;;  %v6494_v7 = vpop.f32.mrb[8].mxu1  ;;  %6586 = vmatprep.mubr.msk.f32.mxu0 %vm393_vm1, %v4328_v1 }
 0x31b   : > { %v6636_v25 = vadd.f32 %v6494_v7, %v8055_v3  ;;  %v4134_v37 = vpop.f32.mrb[9].mxu1  ;;  %6587 = vmatmul.mubr.msk.f32.gmra.mrb[68].mxu0 %vm393_vm1, %v4329_v5  ;;  %v4331_v26 = vmax.f32 %v4299_v62, 0.0 }
 0x31c   : > { %v4330_v30 = vmax.f32 %v4298_v4, 0.0  ;;  %v6637_v16 = vadd.f32 %v4134_v37, %v8057_v11 }
 0x31d   : > { %v4301_v44 = vadd.f32 %v6636_v25, %v8142_v49 }
 0x31e   : > { %v4300_v34 = vadd.f32 %v6637_v16, %v8142_v49  ;;  %v6497_v46 = vpop.f32.mrb[10].mxu1  ;;  %6589 = vmatprep.mubr.msk.f32.mxu0 %vm393_vm1, %v4330_v30 }
 0x31f   : > { %v6638_v47 = vadd.f32 %v6497_v46, %v8063_v22  ;;  %v4144_v9 = vpop.f32.mrb[11].mxu1  ;;  %6590 = vmatmul.mubr.msk.f32.gmra.mrb[70].mxu0 %vm393_vm1, %v4331_v26  ;;  %v4333_v27 = vmax.f32 %v4301_v44, 0.0 }
 0x320   : > { %v4332_v3 = vmax.f32 %v4300_v34, 0.0  ;;  %v6639_v23 = vadd.f32 %v4144_v9, %v8065_v31 }
 0x321   : > { %v4303_v29 = vadd.f32 %v6638_v47, %v8142_v49 }
 0x322   : > { %v4302_v11 = vadd.f32 %v6639_v23, %v8142_v49  ;;  %v6500_v48 = vpop.f32.mrb[12].mxu1  ;;  %6592 = vmatprep.mubr.msk.f32.mxu0 %vm393_vm1, %v4332_v3 }
 0x323   : > { %v6640_v40 = vadd.f32 %v6500_v48, %v8071_v43  ;;  %v4154_v60 = vpop.f32.mrb[13].mxu1  ;;  %6593 = vmatmul.mubr.msk.f32.gmra.mrb[72].mxu0 %vm393_vm1, %v4333_v27  ;;  %v4335_v54 = vmax.f32 %v4303_v29, 0.0 }
 0x324   : > { %v4334_v22 = vmax.f32 %v4302_v11, 0.0  ;;  %v6641_v8 = vadd.f32 %v4154_v60, %v8073_v52 }
 0x325   : > { %v4305_v63 = vadd.f32 %v6640_v40, %v8142_v49 }
 0x326   : > { %v4304_v31 = vadd.f32 %v6641_v8, %v8142_v49  ;;  %v6503_v20 = vpop.f32.mrb[14].mxu1  ;;  %6595 = vmatprep.mubr.msk.f32.mxu0 %vm393_vm1, %v4334_v22 }
 0x327   : > { %v6642_v24 = vadd.f32 %v6503_v20, %v8079_v53  ;;  %v4164_v38 = vpop.f32.mrb[15].mxu1  ;;  %6596 = vmatmul.mubr.msk.f32.gmra.mrb[74].mxu0 %vm393_vm1, %v4335_v54  ;;  %v4337_v6 = vmax.f32 %v4305_v63, 0.0 }
 0x328   : > { %v4336_v43 = vmax.f32 %v4304_v31, 0.0  ;;  %v6643_v58 = vadd.f32 %v4164_v38, %v8081_v2 }
 0x329   : > { %v4307_v61 = vadd.f32 %v6642_v24, %v8142_v49 }
 0x32a   : > { %v4306_v52 = vadd.f32 %v6643_v58, %v8142_v49  ;;  %v6506_v12 = vpop.f32.mrb[16].mxu1  ;;  %6598 = vmatprep.mubr.msk.f32.mxu0 %vm393_vm1, %v4336_v43 }
 0x32b   : > { %v6644_v28 = vadd.f32 %v6506_v12, %v8087_v56  ;;  %v4174_v21 = vpop.f32.mrb[17].mxu1  ;;  %6599 = vmatmul.mubr.msk.f32.gmra.mrb[76].mxu0 %vm393_vm1, %v4337_v6  ;;  %v4339_v33 = vmax.f32 %v4307_v61, 0.0 }
 0x32c   : > { %v4338_v53 = vmax.f32 %v4306_v52, 0.0  ;;  %v6645_v32 = vadd.f32 %v4174_v21, %v8089_v18 }
 0x32d   : > { %v4309_v42 = vadd.f32 %v6644_v28, %v8142_v49 }
 0x32e   : > { %v4308_v2 = vadd.f32 %v6645_v32, %v8142_v49  ;;  %v6509_v41 = vpop.f32.mrb[18].mxu1  ;;  %6601 = vmatprep.mubr.msk.f32.mxu0 %vm393_vm1, %v4338_v53 }
 0x32f   : > { %v6646_v45 = vadd.f32 %v6509_v41, %v8095_v17  ;;  %v4184_v1 = vpop.f32.mrb[19].mxu1  ;;  %6602 = vmatmul.mubr.msk.f32.gmra.mrb[78].mxu0 %vm393_vm1, %v4339_v33  ;;  %v4341_v5 = vmax.f32 %v4309_v42, 0.0 }
 0x330   : > { %v4340_v56 = vmax.f32 %v4308_v2, 0.0  ;;  %v6647_v51 = vadd.f32 %v4184_v1, %v8097_v19 }
 0x331   : > { %v4311_v62 = vadd.f32 %v6646_v45, %v8142_v49 }
 0x332   : > { %v4310_v18 = vadd.f32 %v6647_v51, %v8142_v49  ;;  %v6512_v4 = vpop.f32.mrb[20].mxu1  ;;  %6604 = vmatprep.mubr.msk.f32.mxu0 %vm393_vm1, %v4340_v56 }
 0x333   : > { %v6648_v7 = vadd.f32 %v6512_v4, %v8103_v35  ;;  %v4194_v25 = vpop.f32.mrb[21].mxu1  ;;  %6605 = vmatmul.mubr.msk.f32.gmra.mrb[80].mxu0 %vm393_vm1, %v4341_v5  ;;  %v4343_v30 = vmax.f32 %v4311_v62, 0.0 }
 0x334   : > { %v4342_v17 = vmax.f32 %v4310_v18, 0.0  ;;  %v6649_v37 = vadd.f32 %v4194_v25, %v8105_v36 }
 0x335   : > { %v4313_v16 = vadd.f32 %v6648_v7, %v8142_v49 }
 0x336   : > { %v4312_v19 = vadd.f32 %v6649_v37, %v8142_v49  ;;  %v6515_v26 = vpop.f32.mrb[22].mxu1  ;;  %6607 = vmatprep.mubr.msk.f32.mxu0 %vm393_vm1, %v4342_v17 }
 0x337   : > { %v6650_v44 = vadd.f32 %v6515_v26, %v8110_v39  ;;  %v4204_v34 = vpop.f32.mrb[23].mxu1  ;;  %6608 = vmatmul.mubr.msk.f32.gmra.mrb[82].mxu0 %vm393_vm1, %v4343_v30  ;;  %v4345_v47 = vmax.f32 %v4313_v16, 0.0 }
 0x338   : > { %v4344_v35 = vmax.f32 %v4312_v19, 0.0  ;;  %v6651_v46 = vadd.f32 %v4204_v34, %v8112_v10 }
 0x339   : > { %v4315_v9 = vadd.f32 %v6650_v44, %v8142_v49 }
 0x33a   : > { %v4314_v36 = vadd.f32 %v6651_v46, %v8142_v49  ;;  %v6518_v3 = vpop.f32.mrb[24].mxu1  ;;  %6610 = vmatprep.mubr.msk.f32.mxu0 %vm393_vm1, %v4344_v35 }
 0x33b   : > { %v6652_v23 = vadd.f32 %v6518_v3, %v8115_v14  ;;  %v4214_v27 = vpop.f32.mrb[25].mxu1  ;;  %6611 = vmatmul.mubr.msk.f32.gmra.mrb[84].mxu0 %vm393_vm1, %v4345_v47  ;;  %v4347_v11 = vmax.f32 %v4315_v9, 0.0 }
 0x33c   : > { %v4346_v39 = vmax.f32 %v4314_v36, 0.0  ;;  %v6653_v29 = vadd.f32 %v4214_v27, %v8117_v50 }
 0x33d   : > { %v4317_v48 = vadd.f32 %v6652_v23, %v8142_v49 }
 0x33e   : > { %v4316_v10 = vadd.f32 %v6653_v29, %v8142_v49  ;;  %v6521_v40 = vpop.f32.mrb[26].mxu1  ;;  %6613 = vmatprep.mubr.msk.f32.mxu0 %vm393_vm1, %v4346_v39 }
 0x33f   : > { %v6654_v60 = vadd.f32 %v6521_v40, %v8119_v55  ;;  %v4224_v22 = vpop.f32.mrb[27].mxu1  ;;  %6614 = vmatmul.mubr.msk.f32.gmra.mrb[86].mxu0 %vm393_vm1, %v4347_v11  ;;  %v4349_v54 = vmax.f32 %v4317_v48, 0.0 }
 0x340   : > { %v4348_v14 = vmax.f32 %v4316_v10, 0.0  ;;  %v6655_v8 = vadd.f32 %v4224_v22, %v8121_v57 }
 0x341   : > { %v4319_v63 = vadd.f32 %v6654_v60, %v8142_v49 }
 0x342   : > { %v4318_v50 = vadd.f32 %v6655_v8, %v8142_v49  ;;  %v6524_v31 = vpop.f32.mrb[28].mxu1  ;;  %6616 = vmatprep.mubr.msk.f32.mxu0 %vm393_vm1, %v4348_v14 }
 0x343   : > { %v6656_v20 = vadd.f32 %v6524_v31, %v8123_v0  ;;  %v4234_v24 = vpop.f32.mrb[29].mxu1  ;;  %6617 = vmatmul.mubr.msk.f32.gmra.mrb[88].mxu0 %vm393_vm1, %v4349_v54  ;;  %v4351_v43 = vmax.f32 %v4319_v63, 0.0 }
 0x344   : > { %v4350_v55 = vmax.f32 %v4318_v50, 0.0  ;;  %v6657_v38 = vadd.f32 %v4234_v24, %v8125_v59 }
 0x345   : > { %v4321_v58 = vadd.f32 %v6656_v20, %v8142_v49 }
 0x346   : > { %v4320_v57 = vadd.f32 %v6657_v38, %v8142_v49  ;;  %v6527_v6 = vpop.f32.mrb[30].mxu1  ;;  %6619 = vmatprep.mubr.msk.f32.mxu0 %vm393_vm1, %v4350_v55 }
 0x347   : > { %v6658_v61 = vadd.f32 %v6527_v6, %v8127_v13  ;;  %v4244_v52 = vpop.f32.mrb[31].mxu1  ;;  %6620 = vmatmul.mubr.msk.f32.gmra.mrb[90].mxu0 %vm393_vm1, %v4351_v43  ;;  %v4353_v28 = vmax.f32 %v4321_v58, 0.0  ;;  %v8243_v13 = vld [vmem:[%s8358_s8] ss:$0 sm:$0xff] }
 0x348   : > { %v4352_v0 = vmax.f32 %v4320_v57, 0.0  ;;  %v6659_v12 = vadd.f32 %v4244_v52, %v8129_v15 }
 0x349   : > { %v4323_v59 = vadd.f32 %v6658_v61, %v8142_v49 }
 0x34a   : > { %v4322_v21 = vadd.f32 %v6659_v12, %v8142_v49  ;;  %6622 = vmatprep.mubr.msk.f32.mxu0 %vm393_vm1, %v4352_v0 }
 0x34b   : > { %6623 = vmatmul.mubr.msk.f32.gmra.mrb[92].mxu0 %vm393_vm1, %v4353_v28  ;;  %v4355_v32 = vmax.f32 %v4323_v59, 0.0 }
 0x34c   : > { %v4354_v53 = vmax.f32 %v4322_v21, 0.0 }
 0x34e   : > { %6625 = vmatprep.mubr.msk.f32.mxu0 %vm393_vm1, %v4354_v53 }
 0x34f   : > { %6626 = vmatmul.mubr.msk.f32.gmra.mrb[94].mxu0 %vm393_vm1, %v4355_v32 }
 0x3e6   : > { %v6582_v15 = vpop.f32.mrb[64].mxu0 }
 0x3e7   : > { %v5046_v33 = vadd.f32 %v6582_v15, %v8243_v13  ;;  %v4879_v42 = vpop.f32.mrb[65].mxu0 }
 0x3e8   : > { %v5045_v49 = vadd.f32 %v8243_v13, %v4879_v42 }
 0x3e9   : > { %v5078_v2 = vmax.f32 %v5046_v33, 0.0 }
 0x3ea   : > { %v5077_v41 = vmax.f32 %v5045_v49, 0.0  ;;  %v6585_v45 = vpop.f32.mrb[66].mxu0 }
 0x3eb   : > { %5111 = vst.msk [vmem:[%s8250_s11 + $0x8] sm:$0xff] %vm5109_vm3, %v5078_v2  ;;  %v5048_v1 = vadd.f32 %v6585_v45, %v8243_v13  ;;  %v4889_v56 = vpop.f32.mrb[67].mxu0 }
 0x3ec   : > { %5110 = vst.msk [vmem:[%s8250_s11] sm:$0xff] %vm5109_vm3, %v5077_v41  ;;  %v5047_v51 = vadd.f32 %v8243_v13, %v4889_v56 }
 0x3ed   : > { %v5080_v5 = vmax.f32 %v5048_v1, 0.0 }
 0x3ee   : > { %v5079_v62 = vmax.f32 %v5047_v51, 0.0  ;;  %v6588_v18 = vpop.f32.mrb[68].mxu0 }
 0x3ef   : > { %5113 = vst.msk [vmem:[%s8250_s11 + $0x18] sm:$0xff] %vm5109_vm3, %v5080_v5  ;;  %v5050_v4 = vadd.f32 %v6588_v18, %v8243_v13  ;;  %v4899_v7 = vpop.f32.mrb[69].mxu0 }
 0x3f0   : > { %5112 = vst.msk [vmem:[%s8250_s11 + $0x10] sm:$0xff] %vm5109_vm3, %v5079_v62  ;;  %v5049_v25 = vadd.f32 %v8243_v13, %v4899_v7 }
 0x3f1   : > { %v5082_v17 = vmax.f32 %v5050_v4, 0.0 }
 0x3f2   : > { %v5081_v37 = vmax.f32 %v5049_v25, 0.0  ;;  %v6591_v30 = vpop.f32.mrb[70].mxu0 }
 0x3f3   : > { %5115 = vst.msk [vmem:[%s8250_s11 + $0x28] sm:$0xff] %vm5109_vm3, %v5082_v17  ;;  %v5052_v16 = vadd.f32 %v6591_v30, %v8243_v13  ;;  %v4909_v19 = vpop.f32.mrb[71].mxu0 }
 0x3f4   : > { %5114 = vst.msk [vmem:[%s8250_s11 + $0x20] sm:$0xff] %vm5109_vm3, %v5081_v37  ;;  %v5051_v26 = vadd.f32 %v8243_v13, %v4909_v19 }
 0x3f5   : > { %v5084_v44 = vmax.f32 %v5052_v16, 0.0 }
 0x3f6   : > { %v5083_v34 = vmax.f32 %v5051_v26, 0.0  ;;  %v6594_v35 = vpop.f32.mrb[72].mxu0 }
 0x3f7   : > { %5117 = vst.msk [vmem:[%s8250_s11 + $0x38] sm:$0xff] %vm5109_vm3, %v5084_v44  ;;  %v5054_v46 = vadd.f32 %v6594_v35, %v8243_v13  ;;  %v4919_v47 = vpop.f32.mrb[73].mxu0 }
 0x3f8   : > { %5116 = vst.msk [vmem:[%s8250_s11 + $0x30] sm:$0xff] %vm5109_vm3, %v5083_v34  ;;  %v5053_v9 = vadd.f32 %v8243_v13, %v4919_v47 }
 0x3f9   : > { %v5086_v36 = vmax.f32 %v5054_v46, 0.0 }
 0x3fa   : > { %v5085_v3 = vmax.f32 %v5053_v9, 0.0  ;;  %v6597_v23 = vpop.f32.mrb[74].mxu0 }
 0x3fb   : > { %5119 = vst.msk [vmem:[%s8250_s11 + $0x48] sm:$0xff] %vm5109_vm3, %v5086_v36  ;;  %v5056_v27 = vadd.f32 %v6597_v23, %v8243_v13  ;;  %v4929_v39 = vpop.f32.mrb[75].mxu0 }
 0x3fc   : > { %5118 = vst.msk [vmem:[%s8250_s11 + $0x40] sm:$0xff] %vm5109_vm3, %v5085_v3  ;;  %v5055_v29 = vadd.f32 %v8243_v13, %v4929_v39 }
 0x3fd   : > { %v5088_v11 = vmax.f32 %v5056_v27, 0.0 }
 0x3fe   : > { %v5087_v48 = vmax.f32 %v5055_v29, 0.0  ;;  %v6600_v10 = vpop.f32.mrb[76].mxu0 }
 0x3ff   : > { %5121 = vst.msk [vmem:[%s8250_s11 + $0x58] sm:$0xff] %vm5109_vm3, %v5088_v11  ;;  %v5058_v40 = vadd.f32 %v6600_v10, %v8243_v13  ;;  %v4939_v60 = vpop.f32.mrb[77].mxu0 }
 0x400   : > { %5120 = vst.msk [vmem:[%s8250_s11 + $0x50] sm:$0xff] %vm5109_vm3, %v5087_v48  ;;  %v5057_v22 = vadd.f32 %v8243_v13, %v4939_v60 }
 0x401   : > { %v5090_v14 = vmax.f32 %v5058_v40, 0.0 }
 0x402   : > { %v5089_v8 = vmax.f32 %v5057_v22, 0.0  ;;  %v6603_v54 = vpop.f32.mrb[78].mxu0 }
 0x403   : > { %5123 = vst.msk [vmem:[%s8250_s11 + $0x68] sm:$0xff] %vm5109_vm3, %v5090_v14  ;;  %v5060_v63 = vadd.f32 %v6603_v54, %v8243_v13  ;;  %v4949_v50 = vpop.f32.mrb[79].mxu0 }
 0x404   : > { %5122 = vst.msk [vmem:[%s8250_s11 + $0x60] sm:$0xff] %vm5109_vm3, %v5089_v8  ;;  %v5059_v31 = vadd.f32 %v8243_v13, %v4949_v50 }
 0x405   : > { %v5092_v20 = vmax.f32 %v5060_v63, 0.0 }
 0x406   : > { %v5091_v24 = vmax.f32 %v5059_v31, 0.0  ;;  %v6606_v55 = vpop.f32.mrb[80].mxu0 }
 0x407   : > { %5125 = vst.msk [vmem:[%s8250_s11 + $0x78] sm:$0xff] %vm5109_vm3, %v5092_v20  ;;  %v5062_v38 = vadd.f32 %v6606_v55, %v8243_v13  ;;  %v4959_v43 = vpop.f32.mrb[81].mxu0 }
 0x408   : > { %5124 = vst.msk [vmem:[%s8250_s11 + $0x70] sm:$0xff] %vm5109_vm3, %v5091_v24  ;;  %v5061_v58 = vadd.f32 %v8243_v13, %v4959_v43 }
 0x409   : > { %v5094_v57 = vmax.f32 %v5062_v38, 0.0 }
 0x40a   : > { %v5093_v6 = vmax.f32 %v5061_v58, 0.0  ;;  %v6609_v61 = vpop.f32.mrb[82].mxu0 }
 0x40b   : > { %5127 = vst.msk [vmem:[%s8250_s11 + $0x88] sm:$0xff] %vm5109_vm3, %v5094_v57  ;;  %v5064_v52 = vadd.f32 %v6609_v61, %v8243_v13  ;;  %v4969_v0 = vpop.f32.mrb[83].mxu0 }
 0x40c   : > { %5126 = vst.msk [vmem:[%s8250_s11 + $0x80] sm:$0xff] %vm5109_vm3, %v5093_v6  ;;  %v5063_v12 = vadd.f32 %v8243_v13, %v4969_v0 }
 0x40d   : > { %v5096_v28 = vmax.f32 %v5064_v52, 0.0 }
 0x40e   : > { %v5095_v59 = vmax.f32 %v5063_v12, 0.0  ;;  %v6612_v21 = vpop.f32.mrb[84].mxu0 }
 0x40f   : > { %5129 = vst.msk [vmem:[%s8250_s11 + $0x98] sm:$0xff] %vm5109_vm3, %v5096_v28  ;;  %v5066_v53 = vadd.f32 %v6612_v21, %v8243_v13  ;;  %v4979_v32 = vpop.f32.mrb[85].mxu0 }
 0x410   : > { %5128 = vst.msk [vmem:[%s8250_s11 + $0x90] sm:$0xff] %vm5109_vm3, %v5095_v59  ;;  %v5065_v15 = vadd.f32 %v8243_v13, %v4979_v32 }
 0x411   : > { %v5098_v33 = vmax.f32 %v5066_v53, 0.0 }
 0x412   : > { %v5097_v42 = vmax.f32 %v5065_v15, 0.0  ;;  %v6615_v49 = vpop.f32.mrb[86].mxu0 }
 0x413   : > { %5131 = vst.msk [vmem:[%s8250_s11 + $0xa8] sm:$0xff] %vm5109_vm3, %v5098_v33  ;;  %v5068_v2 = vadd.f32 %v6615_v49, %v8243_v13  ;;  %v4989_v41 = vpop.f32.mrb[87].mxu0 }
 0x414   : > { %5130 = vst.msk [vmem:[%s8250_s11 + $0xa0] sm:$0xff] %vm5109_vm3, %v5097_v42  ;;  %v5067_v45 = vadd.f32 %v8243_v13, %v4989_v41 }
 0x415   : > { %v5100_v1 = vmax.f32 %v5068_v2, 0.0 }
 0x416   : > { %v5099_v56 = vmax.f32 %v5067_v45, 0.0  ;;  %v6618_v51 = vpop.f32.mrb[88].mxu0 }
 0x417   : > { %5133 = vst.msk [vmem:[%s8250_s11 + $0xb8] sm:$0xff] %vm5109_vm3, %v5100_v1  ;;  %v5070_v5 = vadd.f32 %v6618_v51, %v8243_v13  ;;  %v4999_v62 = vpop.f32.mrb[89].mxu0 }
 0x418   : > { %5132 = vst.msk [vmem:[%s8250_s11 + $0xb0] sm:$0xff] %vm5109_vm3, %v5099_v56  ;;  %v5069_v18 = vadd.f32 %v8243_v13, %v4999_v62 }
 0x419   : > { %v5102_v4 = vmax.f32 %v5070_v5, 0.0 }
 0x41a   : > { %v5101_v7 = vmax.f32 %v5069_v18, 0.0  ;;  %v6621_v25 = vpop.f32.mrb[90].mxu0 }
 0x41b   : > { %5135 = vst.msk [vmem:[%s8250_s11 + $0xc8] sm:$0xff] %vm5109_vm3, %v5102_v4  ;;  %v5072_v17 = vadd.f32 %v6621_v25, %v8243_v13  ;;  %v5009_v37 = vpop.f32.mrb[91].mxu0 }
 0x41c   : > { %5134 = vst.msk [vmem:[%s8250_s11 + $0xc0] sm:$0xff] %vm5109_vm3, %v5101_v7  ;;  %v5071_v30 = vadd.f32 %v8243_v13, %v5009_v37 }
 0x41d   : > { %v5104_v16 = vmax.f32 %v5072_v17, 0.0 }
 0x41e   : > { %v5103_v19 = vmax.f32 %v5071_v30, 0.0  ;;  %v6624_v26 = vpop.f32.mrb[92].mxu0 }
 0x41f   : > { %5137 = vst.msk [vmem:[%s8250_s11 + $0xd8] sm:$0xff] %vm5109_vm3, %v5104_v16  ;;  %v5074_v44 = vadd.f32 %v6624_v26, %v8243_v13  ;;  %v5019_v34 = vpop.f32.mrb[93].mxu0 }
 0x420   : > { %5136 = vst.msk [vmem:[%s8250_s11 + $0xd0] sm:$0xff] %vm5109_vm3, %v5103_v19  ;;  %v5073_v35 = vadd.f32 %v8243_v13, %v5019_v34 }
 0x421   : > { %v5106_v46 = vmax.f32 %v5074_v44, 0.0 }
 0x422   : > { %v5105_v47 = vmax.f32 %v5073_v35, 0.0  ;;  %v6627_v9 = vpop.f32.mrb[94].mxu0 }
 0x423   : > { %5139 = vst.msk [vmem:[%s8250_s11 + $0xe8] sm:$0xff] %vm5109_vm3, %v5106_v46  ;;  %v5076_v36 = vadd.f32 %v6627_v9, %v8243_v13  ;;  %v5029_v3 = vpop.f32.mrb[95].mxu0 }
 0x424   : > { %5138 = vst.msk [vmem:[%s8250_s11 + $0xe0] sm:$0xff] %vm5109_vm3, %v5105_v47  ;;  %v5075_v23 = vadd.f32 %v8243_v13, %v5029_v3 }
 0x425   : > { %v5108_v27 = vmax.f32 %v5076_v36, 0.0 }
 0x426   : > { %v5107_v39 = vmax.f32 %v5075_v23, 0.0 }
 0x427   : > { %5141 = vst.msk [vmem:[%s8250_s11 + $0xf8] sm:$0xff] %vm5109_vm3, %v5108_v27 }
 0x428   : > { %5140 = vst.msk [vmem:[%s8250_s11 + $0xf0] sm:$0xff] %vm5109_vm3, %v5107_v39 }
 0x429 PF: > { %s19_s30 = sadd.s32 1, %s6931_s30  }
 0x42a   : > { %p16_p4 = scmp.ge.s32.totalorder %s19_s30, 4  }
 0x42c   :  { %18 = sbr.rel (!%p16_p4) target bundleno = 1 (0x1), region = 99 }

</bundles_post_ra>
